<compile_context>
chip_gen: v5e
topology: v5e:2x2
jax: 0.10.0
libtpu: 0.0.40
codegen_flags: <defaults>
</compile_context>

<pallas_src>
import math
from functools import partial

import jax
import jax.numpy as jnp
from jax.experimental import pallas as pl
from jax.experimental.pallas import tpu as pltpu


def mha_kernel(q_ref, k_ref, v_ref,
               wq_ref, bq_ref, wk_ref, bk_ref, wv_ref, bv_ref,
               wo_ref, bo_ref,
               *refs,
               scale, block_h, head_dim, store_attn, approx_recip):
    if store_attn:
        out_ref, attn_ref = refs[0], refs[1]
        kp_ref, vp_ref, acc_ref = refs[2], refs[3], refs[4]
    else:
        out_ref, attn_ref = refs[0], None
        kp_ref, vp_ref, acc_ref = refs[1], refs[2], refs[3]

    i = pl.program_id(1)                    # query-block index
    h = pl.program_id(2)                    # head-group index
    last_h = pl.num_programs(2) - 1

    Bb, Qt, D = q_ref.shape
    Nk = k_ref.shape[1]
    ghd = block_h * head_dim                # lanes covered by this head group
    cdt = kp_ref.dtype                      # MXU operand dtype (f32 or bf16)

    # ---- K/V projection for this head group: once per batch block ----------
    # Cached in VMEM scratch and reused by every query block (query axis is
    # NOT megacore-sharded, so i==0 always runs first on each core).
    @pl.when(i == 0)
    def _():
        k2 = k_ref[...].reshape(Bb * Nk, D)
        v2 = v_ref[...].reshape(Bb * Nk, D)
        kp = jnp.dot(k2, wk_ref[...], preferred_element_type=jnp.float32) + bk_ref[...]
        vp = jnp.dot(v2, wv_ref[...], preferred_element_type=jnp.float32) + bv_ref[...]
        kp_ref[h] = kp.reshape(Bb, Nk, ghd).astype(cdt)   # cast once, stays cdt
        vp_ref[h] = vp.reshape(Bb, Nk, ghd).astype(cdt)

    # ---- Q projection for this (batch, query, head-group) step -------------
    q2 = q_ref[...].reshape(Bb * Qt, D)
    qp = jnp.dot(q2, wq_ref[...], preferred_element_type=jnp.float32) + bq_ref[...]
    qp = qp.astype(cdt)                                    # cast once after bias

    kh = kp_ref[h]                                         # (Bb, Nk, ghd)
    vh = vp_ref[h]

    # ---- per-head scaled-dot-product attention (static, unrolled loop;
    #      all slices are static lane slices, no dynamic lane indexing) ------
    o_parts = []
    for u in range(block_h):
        lo, hi = u * head_dim, (u + 1) * head_dim
        qh_u = qp[:, lo:hi].reshape(Bb, Qt, head_dim)
        kh_u = kh[:, :, lo:hi]
        vh_u = vh[:, :, lo:hi]

        s = jnp.einsum("bqd,bkd->bqk", qh_u, kh_u,
                       preferred_element_type=jnp.float32) * scale
        s = s - jnp.max(s, axis=-1, keepdims=True)
        p = jnp.exp(s)
        p = p * pl.reciprocal(jnp.sum(p, axis=-1, keepdims=True),
                              approx=approx_recip)

        if store_attn:
            # lane-dense (Nk-wide) store of this head's probabilities
            attn_ref[:, u, :, :] = p.astype(attn_ref.dtype)

        o_parts.append(jnp.einsum("bqk,bkd->bqd", p.astype(cdt), vh_u,
                                  preferred_element_type=jnp.float32))

    # (Bb, Qt, ghd) -> (Bb*Qt, ghd): wide operand for the out-projection matmul
    o = jnp.concatenate(o_parts, axis=-1).reshape(Bb * Qt, ghd).astype(cdt)

    # ---- output projection: accumulate head-group contributions in f32 -----
    @pl.when(h == 0)
    def _():
        acc_ref[...] = jnp.zeros_like(acc_ref)

    acc_ref[...] += jnp.dot(o, wo_ref[...], preferred_element_type=jnp.float32)

    @pl.when(h == last_h)
    def _():
        out = acc_ref[...] + bo_ref[...]
        out_ref[...] = out.reshape(Bb, Qt, D).astype(out_ref.dtype)


def _default_vmem_limit_bytes():
    # Generation-aware VMEM budget: ~40 MiB on v7x (64 MiB/TC), ~100 MiB on
    # v5e/v6e (128 MiB/TC); always leave headroom for Mosaic's own scratch.
    cap = 128 * 1024 * 1024
    try:
        cap = int(pltpu.get_tpu_info().vmem_capacity_bytes)
    except Exception:
        pass
    return int(max(32 * 1024 * 1024, min(100 * 1024 * 1024, cap - 24 * 1024 * 1024)))


def multihead_attention(query, key, value, params, num_heads, *,
                        block_b=None, block_q=None, block_h=None,
                        compute_dtype=None, need_weights=True,
                        attn_dtype=jnp.float32, max_group_lanes=256,
                        vmem_limit_bytes=None):
    """Fused MHA forward.

    params = (wq, bq, wk, bk, wv, bv, wo, bo) with weights already transposed
    to (in_features, out_features) layout and biases of shape (D,).  Returns
    (out (B,Nq,D), attn (B,H,Nq,Nk) or None), matching the PyTorch module's
    (out, attn) tuple (per-head attention weights).
    """
    B, Nq, D = query.shape
    Nk = key.shape[1]
    assert D % num_heads == 0, "dim must be divisible by num_heads"
    hd = D // num_heads
    wq, bq, wk, bk, wv, bv, wo, bo = params

    mx = jnp.dtype(query.dtype if compute_dtype is None else compute_dtype)
    approx_recip = bool(mx.itemsize < 4)     # EUP approx recip only for low precision
    sub = 16 if mx.itemsize == 2 else 8      # bf16 packs 16 sublane rows per vreg

    # --- block-size defaults --------------------------------------------------
    # block_b=1 keeps >= B parallel grid steps (v7x 2nd TensorCore gets work).
    if block_b is None:
        block_b = 1 if B > 1 else B
    if block_q is None:
        block_q = Nq if Nq <= 128 else (128 if Nq % 128 == 0 else Nq)
    if block_h is None:                      # pass max_group_lanes=128 on v5e
        block_h = 1
        for c in range(num_heads, 0, -1):
            if num_heads % c == 0 and c * hd <= max(max_group_lanes, hd):
                block_h = c
                break
    assert B % block_b == 0, "block_b must divide B"
    assert Nq % block_q == 0, "block_q must divide Nq"
    assert num_heads % block_h == 0, "block_h must divide num_heads"
    assert block_q == Nq or block_q % sub == 0, (
        f"block_q must be a multiple of {sub} for compute dtype {mx}")

    ghd = block_h * hd
    G = num_heads // block_h                 # number of head groups

    # --- head-group-major weight/bias layouts (built once, outside the kernel)
    def group_cols(w):                       # (D, D) (in,out) -> (G, D, ghd)
        return jnp.asarray(w).reshape(D, G, ghd).transpose(1, 0, 2).astype(mx)

    wq_g = group_cols(wq)
    wk_g = group_cols(wk)
    wv_g = group_cols(wv)
    wo_g = jnp.asarray(wo).reshape(G, ghd, D).astype(mx)
    # biases stay f32: added to f32 matmul accumulations inside the kernel
    bq_g = jnp.asarray(bq, jnp.float32).reshape(G, 1, ghd)
    bk_g = jnp.asarray(bk, jnp.float32).reshape(G, 1, ghd)
    bv_g = jnp.asarray(bv, jnp.float32).reshape(G, 1, ghd)
    bo_2 = jnp.asarray(bo, jnp.float32).reshape(1, D)

    qx = query.astype(mx)
    kx = key.astype(mx)
    vx = value.astype(mx)

    grid = (B // block_b, Nq // block_q, G)

    q_spec = pl.BlockSpec((block_b, block_q, D), lambda b, i, h: (b, i, 0))
    kv_spec = pl.BlockSpec((block_b, Nk, D), lambda b, i, h: (b, 0, 0))
    w_in_spec = pl.BlockSpec((None, D, ghd), lambda b, i, h: (h, 0, 0))
    b_in_spec = pl.BlockSpec((None, 1, ghd), lambda b, i, h: (h, 0, 0))
    w_out_spec = pl.BlockSpec((None, ghd, D), lambda b, i, h: (h, 0, 0))
    b_out_spec = pl.BlockSpec((1, D), lambda b, i, h: (0, 0))
    out_spec = pl.BlockSpec((block_b, block_q, D), lambda b, i, h: (b, i, 0))

    if need_weights:
        out_shape = (jax.ShapeDtypeStruct((B, Nq, D), query.dtype),
                     jax.ShapeDtypeStruct((B, num_heads, Nq, Nk), attn_dtype))
        out_specs = (out_spec,
                     pl.BlockSpec((block_b, block_h, block_q, Nk),
                                  lambda b, i, h: (b, h, i, 0)))
    else:
        out_shape = jax.ShapeDtypeStruct((B, Nq, D), query.dtype)
        out_specs = out_spec

    scratch_shapes = [
        pltpu.VMEM((G, block_b, Nk, ghd), mx),            # cached K projection
        pltpu.VMEM((G, block_b, Nk, ghd), mx),            # cached V projection
        pltpu.VMEM((block_b * block_q, D), jnp.float32),  # out-proj accumulator
    ]

    kernel = partial(mha_kernel, scale=1.0 / math.sqrt(hd), block_h=block_h,
                     head_dim=hd, store_attn=need_weights,
                     approx_recip=approx_recip)

    if vmem_limit_bytes is None:
        vmem_limit_bytes = _default_vmem_limit_bytes()

    result = pl.pallas_call(
        kernel,
        out_shape=out_shape,
        grid=grid,
        in_specs=[q_spec, kv_spec, kv_spec,
                  w_in_spec, b_in_spec, w_in_spec, b_in_spec,
                  w_in_spec, b_in_spec, w_out_spec, b_out_spec],
        out_specs=out_specs,
        scratch_shapes=scratch_shapes,
        compiler_params=pltpu.CompilerParams(
            # Only the batch axis is megacore-"parallel": the cached K/V scratch
            # is reused across query blocks and the out accumulator spans the
            # head-group axis, so neither of those axes may be core-sharded.
            dimension_semantics=("parallel", "arbitrary", "arbitrary"),
            vmem_limit_bytes=int(vmem_limit_bytes),
        ),
    )(qx, kx, vx, wq_g, bq_g, wk_g, bk_g, wv_g, bv_g, wo_g, bo_2)

    if need_weights:
        out, attn = result
        return out, attn
    return result, None


def reference_mha(query, key, value, params, num_heads):
    """Pure-JAX reference mirroring the PyTorch forward."""
    B, Nq, D = query.shape
    Nk = key.shape[1]
    hd = D // num_heads
    wq, bq, wk, bk, wv, bv, wo, bo = params
    q = (query @ wq + bq).reshape(B, Nq, num_heads, hd).transpose(0, 2, 1, 3)
    k = (key @ wk + bk).reshape(B, Nk, num_heads, hd).transpose(0, 2, 1, 3)
    v = (value @ wv + bv).reshape(B, Nk, num_heads, hd).transpose(0, 2, 1, 3)
    attn = jnp.einsum("bhqd,bhkd->bhqk", q, k) / math.sqrt(hd)
    attn = jax.nn.softmax(attn, axis=-1)
    out = jnp.einsum("bhqk,bhkd->bhqd", attn, v)
    out = out.transpose(0, 2, 1, 3).reshape(B, Nq, D)
    return out @ wo + bo, attn


if __name__ == "__main__":
    B, Nq, Nk, D, H = 2, 16, 16, 32, 4

    key0 = jax.random.PRNGKey(0)
    keys = jax.random.split(key0, 11)

    # Deterministic synthetic parameters (nn.Linear(dim, dim): W (out,in), b (out,)).
    def linear_params(kw, kb):
        w_torch = jax.random.normal(kw, (D, D), jnp.float32) * 0.1   # (out, in)
        b = jax.random.normal(kb, (D,), jnp.float32) * 0.1
        return w_torch.T, b                                          # (in, out), (D,)

    wq, bq = linear_params(keys[0], keys[1])
    wk, bk = linear_params(keys[2], keys[3])
    wv, bv = linear_params(keys[4], keys[5])
    wo, bo = linear_params(keys[6], keys[7])
    params = (wq, bq, wk, bk, wv, bv, wo, bo)

    query = jax.random.normal(keys[8], (B, Nq, D), jnp.float32)
    key_in = jax.random.normal(keys[9], (B, Nk, D), jnp.float32)
    value = jax.random.normal(keys[10], (B, Nk, D), jnp.float32)

    out_exp, attn_exp = reference_mha(query, key_in, value, params, H)

    # Tolerances accommodate the TPU's default matmul precision on either side
    # of the comparison; real layout/bias/head-mapping bugs are O(0.1) errors.
    TOL = dict(atol=1e-2, rtol=1e-2)
    TOL_BF16 = dict(atol=5e-2, rtol=5e-2)

    # 1) f32, defaults: grid (2, 1, 1), one 4-head group per step.
    out1, attn1 = multihead_attention(query, key_in, value, params, H)
    jax.block_until_ready((out1, attn1))
    assert out1.shape == (B, Nq, D) and attn1.shape == (B, H, Nq, Nk)
    assert jnp.allclose(out1, out_exp, **TOL)
    assert jnp.allclose(attn1, attn_exp, **TOL)

    # 2) f32, tiled: grid (2, 2, 2) — exercises the cached K/V projection across
    #    query blocks and the head-group output accumulator.
    out2, attn2 = multihead_attention(query, key_in, value, params, H,
                                      block_b=1, block_q=8, block_h=2)
    jax.block_until_ready((out2, attn2))
    assert jnp.allclose(out2, out_exp, **TOL)
    assert jnp.allclose(attn2, attn_exp, **TOL)

    # 3) f32, no attention-weights writeback (PyTorch need_weights=False path).
    out3, attn3 = multihead_attention(query, key_in, value, params, H,
                                      need_weights=False)
    jax.block_until_ready(out3)
    assert attn3 is None
    assert jnp.allclose(out3, out_exp, **TOL)

    # 4) bf16 MXU operands, f32 accumulation + f32 softmax (loose check).
    out4, attn4 = multihead_attention(query, key_in, value, params, H,
                                      compute_dtype=jnp.bfloat16)
    jax.block_until_ready((out4, attn4))
    assert jnp.allclose(out4.astype(jnp.float32), out_exp, **TOL_BF16)
    assert jnp.allclose(attn4.astype(jnp.float32), attn_exp, **TOL_BF16)

    print("KERNEL_OK")
</pallas_src>

<mosaic_0001>
module attributes {stable_mosaic.version = 11 : i64} {
  func.func @mha_kernel(%arg0: i32, %arg1: i32, %arg2: i32, %arg3: memref<1x16x32xf32, #tpu.memory_space<vmem>>, %arg4: memref<1x16x32xf32, #tpu.memory_space<vmem>>, %arg5: memref<1x16x32xf32, #tpu.memory_space<vmem>>, %arg6: memref<1x32x32xf32, #tpu.memory_space<vmem>>, %arg7: memref<1x1x32xf32, #tpu.memory_space<vmem>>, %arg8: memref<1x32x32xf32, #tpu.memory_space<vmem>>, %arg9: memref<1x1x32xf32, #tpu.memory_space<vmem>>, %arg10: memref<1x32x32xf32, #tpu.memory_space<vmem>>, %arg11: memref<1x1x32xf32, #tpu.memory_space<vmem>>, %arg12: memref<1x32x32xf32, #tpu.memory_space<vmem>>, %arg13: memref<1x32xf32, #tpu.memory_space<vmem>>, %arg14: memref<1x16x32xf32, #tpu.memory_space<vmem>>, %arg15: memref<1x4x16x16xf32, #tpu.memory_space<vmem>>, %arg16: memref<1x1x16x32xf32, #tpu.memory_space<vmem>>, %arg17: memref<1x1x16x32xf32, #tpu.memory_space<vmem>>, %arg18: memref<16x32xf32, #tpu.memory_space<vmem>>) attributes {dimension_semantics = [#tpu.dimension_semantics<parallel>, #tpu.dimension_semantics<arbitrary>, #tpu.dimension_semantics<arbitrary>], iteration_bounds = array<i64: 2, 1, 1>, scalar_prefetch = 0 : i64, scratch_operands = 3 : i64, tpu.core_type = #tpu.core_type<tc>, window_params = [{transform_indices = @transform_0, window_bounds = array<i64: 1, 16, 32>}, {transform_indices = @transform_1, window_bounds = array<i64: 1, 16, 32>}, {transform_indices = @transform_2, window_bounds = array<i64: 1, 16, 32>}, {transform_indices = @transform_3, window_bounds = array<i64: 1, 32, 32>}, {transform_indices = @transform_4, window_bounds = array<i64: 1, 1, 32>}, {transform_indices = @transform_5, window_bounds = array<i64: 1, 32, 32>}, {transform_indices = @transform_6, window_bounds = array<i64: 1, 1, 32>}, {transform_indices = @transform_7, window_bounds = array<i64: 1, 32, 32>}, {transform_indices = @transform_8, window_bounds = array<i64: 1, 1, 32>}, {transform_indices = @transform_9, window_bounds = array<i64: 1, 32, 32>}, {pipeline_mode = #tpu.pipeline_mode<synchronous>, transform_indices = @transform_10, window_bounds = array<i64: 1, 32>}, {transform_indices = @transform_11, window_bounds = array<i64: 1, 16, 32>}, {transform_indices = @transform_12, window_bounds = array<i64: 1, 4, 16, 16>}]} {
    %c0_i32 = arith.constant 0 : i32
    %0 = arith.cmpi eq, %arg1, %c0_i32 : i32
    %1 = arith.extui %0 : i1 to i32
    %c0_i32_0 = arith.constant 0 : i32
    %2 = arith.cmpi ne, %1, %c0_i32_0 : i32
    scf.if %2 {
      %c0_60 = arith.constant 0 : index
      %c0_61 = arith.constant 0 : index
      %c0_62 = arith.constant 0 : index
      %116 = vector.load %arg4[%c0_60, %c0_61, %c0_62] : memref<1x16x32xf32, #tpu.memory_space<vmem>>, vector<1x16x32xf32>
      %117 = vector.shape_cast %116 : vector<1x16x32xf32> to vector<16x32xf32>
      %c0_63 = arith.constant 0 : index
      %c0_64 = arith.constant 0 : index
      %c0_65 = arith.constant 0 : index
      %118 = vector.load %arg5[%c0_63, %c0_64, %c0_65] : memref<1x16x32xf32, #tpu.memory_space<vmem>>, vector<1x16x32xf32>
      %119 = vector.shape_cast %118 : vector<1x16x32xf32> to vector<16x32xf32>
      %c0_66 = arith.constant 0 : index
      %c0_67 = arith.constant 0 : index
      %c0_68 = arith.constant 0 : index
      %120 = vector.load %arg8[%c0_66, %c0_67, %c0_68] : memref<1x32x32xf32, #tpu.memory_space<vmem>>, vector<1x32x32xf32>
      %121 = vector.shape_cast %120 : vector<1x32x32xf32> to vector<32x32xf32>
      %cst_69 = arith.constant dense<0.000000e+00> : vector<16x32xf32>
      %122 = tpu.matmul %117, %121, %cst_69 {dimension_numbers = #tpu.dot_dimension_numbers<[1], [0], [0], [1], [0, 0, 1, 1], [], []>} : vector<16x32xf32>, vector<32x32xf32>, vector<16x32xf32> -> vector<16x32xf32>
      %c0_70 = arith.constant 0 : index
      %c0_71 = arith.constant 0 : index
      %c0_72 = arith.constant 0 : index
      %123 = vector.load %arg9[%c0_70, %c0_71, %c0_72] : memref<1x1x32xf32, #tpu.memory_space<vmem>>, vector<1x1x32xf32>
      %124 = vector.shape_cast %123 : vector<1x1x32xf32> to vector<1x32xf32>
      %125 = vector.broadcast %124 : vector<1x32xf32> to vector<16x32xf32>
      %126 = arith.addf %122, %125 : vector<16x32xf32>
      %c0_73 = arith.constant 0 : index
      %c0_74 = arith.constant 0 : index
      %c0_75 = arith.constant 0 : index
      %127 = vector.load %arg10[%c0_73, %c0_74, %c0_75] : memref<1x32x32xf32, #tpu.memory_space<vmem>>, vector<1x32x32xf32>
      %128 = vector.shape_cast %127 : vector<1x32x32xf32> to vector<32x32xf32>
      %cst_76 = arith.constant dense<0.000000e+00> : vector<16x32xf32>
      %129 = tpu.matmul %119, %128, %cst_76 {dimension_numbers = #tpu.dot_dimension_numbers<[1], [0], [0], [1], [0, 0, 1, 1], [], []>} : vector<16x32xf32>, vector<32x32xf32>, vector<16x32xf32> -> vector<16x32xf32>
      %c0_77 = arith.constant 0 : index
      %c0_78 = arith.constant 0 : index
      %c0_79 = arith.constant 0 : index
      %130 = vector.load %arg11[%c0_77, %c0_78, %c0_79] : memref<1x1x32xf32, #tpu.memory_space<vmem>>, vector<1x1x32xf32>
      %131 = vector.shape_cast %130 : vector<1x1x32xf32> to vector<1x32xf32>
      %132 = vector.broadcast %131 : vector<1x32xf32> to vector<16x32xf32>
      %133 = arith.addf %129, %132 : vector<16x32xf32>
      %134 = vector.shape_cast %126 : vector<16x32xf32> to vector<1x16x32xf32>
      %135 = arith.index_cast %arg2 : i32 to index
      %c0_80 = arith.constant 0 : index
      %c0_81 = arith.constant 0 : index
      %c0_82 = arith.constant 0 : index
      %136 = vector.load %arg16[%135, %c0_80, %c0_81, %c0_82] : memref<1x1x16x32xf32, #tpu.memory_space<vmem>>, vector<1x1x16x32xf32>
      %137 = vector.shape_cast %136 : vector<1x1x16x32xf32> to vector<1x16x32xf32>
      %138 = vector.shape_cast %134 : vector<1x16x32xf32> to vector<1x1x16x32xf32>
      tpu.vector_store %arg16[%135, %c0_80, %c0_81, %c0_82], %138 {strides = array<i32>} : memref<1x1x16x32xf32, #tpu.memory_space<vmem>>, vector<1x1x16x32xf32>,
      %139 = vector.shape_cast %133 : vector<16x32xf32> to vector<1x16x32xf32>
      %140 = arith.index_cast %arg2 : i32 to index
      %c0_83 = arith.constant 0 : index
      %c0_84 = arith.constant 0 : index
      %c0_85 = arith.constant 0 : index
      %141 = vector.load %arg17[%140, %c0_83, %c0_84, %c0_85] : memref<1x1x16x32xf32, #tpu.memory_space<vmem>>, vector<1x1x16x32xf32>
      %142 = vector.shape_cast %141 : vector<1x1x16x32xf32> to vector<1x16x32xf32>
      %143 = vector.shape_cast %139 : vector<1x16x32xf32> to vector<1x1x16x32xf32>
      tpu.vector_store %arg17[%140, %c0_83, %c0_84, %c0_85], %143 {strides = array<i32>} : memref<1x1x16x32xf32, #tpu.memory_space<vmem>>, vector<1x1x16x32xf32>,
    } else {
    }
    %c0 = arith.constant 0 : index
    %c0_1 = arith.constant 0 : index
    %c0_2 = arith.constant 0 : index
    %3 = vector.load %arg3[%c0, %c0_1, %c0_2] : memref<1x16x32xf32, #tpu.memory_space<vmem>>, vector<1x16x32xf32>
    %4 = vector.shape_cast %3 : vector<1x16x32xf32> to vector<16x32xf32>
    %c0_3 = arith.constant 0 : index
    %c0_4 = arith.constant 0 : index
    %c0_5 = arith.constant 0 : index
    %5 = vector.load %arg6[%c0_3, %c0_4, %c0_5] : memref<1x32x32xf32, #tpu.memory_space<vmem>>, vector<1x32x32xf32>
    %6 = vector.shape_cast %5 : vector<1x32x32xf32> to vector<32x32xf32>
    %cst = arith.constant dense<0.000000e+00> : vector<16x32xf32>
    %7 = tpu.matmul %4, %6, %cst {dimension_numbers = #tpu.dot_dimension_numbers<[1], [0], [0], [1], [0, 0, 1, 1], [], []>} : vector<16x32xf32>, vector<32x32xf32>, vector<16x32xf32> -> vector<16x32xf32>
    %c0_6 = arith.constant 0 : index
    %c0_7 = arith.constant 0 : index
    %c0_8 = arith.constant 0 : index
    %8 = vector.load %arg7[%c0_6, %c0_7, %c0_8] : memref<1x1x32xf32, #tpu.memory_space<vmem>>, vector<1x1x32xf32>
    %9 = vector.shape_cast %8 : vector<1x1x32xf32> to vector<1x32xf32>
    %10 = vector.broadcast %9 : vector<1x32xf32> to vector<16x32xf32>
    %11 = arith.addf %7, %10 : vector<16x32xf32>
    %12 = arith.index_cast %arg2 : i32 to index
    %c0_9 = arith.constant 0 : index
    %c0_10 = arith.constant 0 : index
    %c0_11 = arith.constant 0 : index
    %13 = vector.load %arg16[%12, %c0_9, %c0_10, %c0_11] : memref<1x1x16x32xf32, #tpu.memory_space<vmem>>, vector<1x1x16x32xf32>
    %14 = vector.shape_cast %13 : vector<1x1x16x32xf32> to vector<1x16x32xf32>
    %15 = arith.index_cast %arg2 : i32 to index
    %c0_12 = arith.constant 0 : index
    %c0_13 = arith.constant 0 : index
    %c0_14 = arith.constant 0 : index
    %16 = vector.load %arg17[%15, %c0_12, %c0_13, %c0_14] : memref<1x1x16x32xf32, #tpu.memory_space<vmem>>, vector<1x1x16x32xf32>
    %17 = vector.shape_cast %16 : vector<1x1x16x32xf32> to vector<1x16x32xf32>
    %18 = vector.extract_strided_slice %11 {offsets = [0, 0], sizes = [16, 8], strides = [1, 1]} : vector<16x32xf32> to vector<16x8xf32>
    %19 = vector.shape_cast %18 : vector<16x8xf32> to vector<1x16x8xf32>
    %20 = vector.extract_strided_slice %14 {offsets = [0, 0, 0], sizes = [1, 16, 8], strides = [1, 1, 1]} : vector<1x16x32xf32> to vector<1x16x8xf32>
    %21 = vector.extract_strided_slice %17 {offsets = [0, 0, 0], sizes = [1, 16, 8], strides = [1, 1, 1]} : vector<1x16x32xf32> to vector<1x16x8xf32>
    "tpu.trace_start"() <{level = 10 : i32, message = "bqd,bkd->bqk"}> : () -> ()
    %cst_15 = arith.constant dense<0.000000e+00> : vector<1x16x16xf32>
    %22 = tpu.matmul %19, %20, %cst_15 {dimension_numbers = #tpu.dot_dimension_numbers<[2], [2], [1], [1], [0, 0, 0, 1, 1, 1], [0], [0]>} : vector<1x16x8xf32>, vector<1x16x8xf32>, vector<1x16x16xf32> -> vector<1x16x16xf32>
    "tpu.trace_stop"() : () -> ()
    %cst_16 = arith.constant 0.353553385 : f32
    %23 = vector.broadcast %cst_16 : f32 to vector<1x16x16xf32>
    %24 = arith.mulf %22, %23 : vector<1x16x16xf32>
    %cst_17 = arith.constant dense<0xFF800000> : vector<1x16xf32>
    %25 = vector.multi_reduction <maximumf>, %24, %cst_17 [2] : vector<1x16x16xf32> to vector<1x16xf32>
    %26 = vector.shape_cast %25 : vector<1x16xf32> to vector<1x16x1xf32>
    %27 = vector.broadcast %26 : vector<1x16x1xf32> to vector<1x16x16xf32>
    %28 = arith.subf %24, %27 : vector<1x16x16xf32>
    %29 = math.exp %28 : vector<1x16x16xf32>
    %cst_18 = arith.constant dense<0.000000e+00> : vector<1x16xf32>
    %30 = vector.multi_reduction <add>, %29, %cst_18 [2] : vector<1x16x16xf32> to vector<1x16xf32>
    %31 = vector.shape_cast %30 : vector<1x16xf32> to vector<1x16x1xf32>
    %32 = tpu.reciprocal %31 : vector<1x16x1xf32> -> vector<1x16x1xf32>
    %33 = vector.broadcast %32 : vector<1x16x1xf32> to vector<1x16x16xf32>
    %34 = arith.mulf %29, %33 : vector<1x16x16xf32>
    %c0_19 = arith.constant 0 : index
    %c0_20 = arith.constant 0 : index
    %c0_21 = arith.constant 0 : index
    %c0_22 = arith.constant 0 : index
    %35 = vector.load %arg15[%c0_19, %c0_20, %c0_21, %c0_22] : memref<1x4x16x16xf32, #tpu.memory_space<vmem>>, vector<1x1x16x16xf32>
    %36 = vector.shape_cast %35 : vector<1x1x16x16xf32> to vector<1x16x16xf32>
    %37 = vector.shape_cast %34 : vector<1x16x16xf32> to vector<1x1x16x16xf32>
    tpu.vector_store %arg15[%c0_19, %c0_20, %c0_21, %c0_22], %37 {strides = array<i32>} : memref<1x4x16x16xf32, #tpu.memory_space<vmem>>, vector<1x1x16x16xf32>,
    "tpu.trace_start"() <{level = 10 : i32, message = "bqk,bkd->bqd"}> : () -> ()
    %cst_23 = arith.constant dense<0.000000e+00> : vector<1x16x8xf32>
    %38 = tpu.matmul %34, %21, %cst_23 {dimension_numbers = #tpu.dot_dimension_numbers<[2], [1], [1], [2], [0, 0, 0, 1, 1, 2], [0], [0]>} : vector<1x16x16xf32>, vector<1x16x8xf32>, vector<1x16x8xf32> -> vector<1x16x8xf32>
    "tpu.trace_stop"() : () -> ()
    %39 = vector.extract_strided_slice %11 {offsets = [0, 8], sizes = [16, 8], strides = [1, 1]} : vector<16x32xf32> to vector<16x8xf32>
    %40 = vector.shape_cast %39 : vector<16x8xf32> to vector<1x16x8xf32>
    %41 = vector.extract_strided_slice %14 {offsets = [0, 0, 8], sizes = [1, 16, 8], strides = [1, 1, 1]} : vector<1x16x32xf32> to vector<1x16x8xf32>
    %42 = vector.extract_strided_slice %17 {offsets = [0, 0, 8], sizes = [1, 16, 8], strides = [1, 1, 1]} : vector<1x16x32xf32> to vector<1x16x8xf32>
    "tpu.trace_start"() <{level = 10 : i32, message = "bqd,bkd->bqk"}> : () -> ()
    %cst_24 = arith.constant dense<0.000000e+00> : vector<1x16x16xf32>
    %43 = tpu.matmul %40, %41, %cst_24 {dimension_numbers = #tpu.dot_dimension_numbers<[2], [2], [1], [1], [0, 0, 0, 1, 1, 1], [0], [0]>} : vector<1x16x8xf32>, vector<1x16x8xf32>, vector<1x16x16xf32> -> vector<1x16x16xf32>
    "tpu.trace_stop"() : () -> ()
    %cst_25 = arith.constant 0.353553385 : f32
    %44 = vector.broadcast %cst_25 : f32 to vector<1x16x16xf32>
    %45 = arith.mulf %43, %44 : vector<1x16x16xf32>
    %cst_26 = arith.constant dense<0xFF800000> : vector<1x16xf32>
    %46 = vector.multi_reduction <maximumf>, %45, %cst_26 [2] : vector<1x16x16xf32> to vector<1x16xf32>
    %47 = vector.shape_cast %46 : vector<1x16xf32> to vector<1x16x1xf32>
    %48 = vector.broadcast %47 : vector<1x16x1xf32> to vector<1x16x16xf32>
    %49 = arith.subf %45, %48 : vector<1x16x16xf32>
    %50 = math.exp %49 : vector<1x16x16xf32>
    %cst_27 = arith.constant dense<0.000000e+00> : vector<1x16xf32>
    %51 = vector.multi_reduction <add>, %50, %cst_27 [2] : vector<1x16x16xf32> to vector<1x16xf32>
    %52 = vector.shape_cast %51 : vector<1x16xf32> to vector<1x16x1xf32>
    %53 = tpu.reciprocal %52 : vector<1x16x1xf32> -> vector<1x16x1xf32>
    %54 = vector.broadcast %53 : vector<1x16x1xf32> to vector<1x16x16xf32>
    %55 = arith.mulf %50, %54 : vector<1x16x16xf32>
    %c0_28 = arith.constant 0 : index
    %c1 = arith.constant 1 : index
    %c0_29 = arith.constant 0 : index
    %c0_30 = arith.constant 0 : index
    %56 = vector.load %arg15[%c0_28, %c1, %c0_29, %c0_30] : memref<1x4x16x16xf32, #tpu.memory_space<vmem>>, vector<1x1x16x16xf32>
    %57 = vector.shape_cast %56 : vector<1x1x16x16xf32> to vector<1x16x16xf32>
    %58 = vector.shape_cast %55 : vector<1x16x16xf32> to vector<1x1x16x16xf32>
    tpu.vector_store %arg15[%c0_28, %c1, %c0_29, %c0_30], %58 {strides = array<i32>} : memref<1x4x16x16xf32, #tpu.memory_space<vmem>>, vector<1x1x16x16xf32>,
    "tpu.trace_start"() <{level = 10 : i32, message = "bqk,bkd->bqd"}> : () -> ()
    %cst_31 = arith.constant dense<0.000000e+00> : vector<1x16x8xf32>
    %59 = tpu.matmul %55, %42, %cst_31 {dimension_numbers = #tpu.dot_dimension_numbers<[2], [1], [1], [2], [0, 0, 0, 1, 1, 2], [0], [0]>} : vector<1x16x16xf32>, vector<1x16x8xf32>, vector<1x16x8xf32> -> vector<1x16x8xf32>
    "tpu.trace_stop"() : () -> ()
    %60 = vector.extract_strided_slice %11 {offsets = [0, 16], sizes = [16, 8], strides = [1, 1]} : vector<16x32xf32> to vector<16x8xf32>
    %61 = vector.shape_cast %60 : vector<16x8xf32> to vector<1x16x8xf32>
    %62 = vector.extract_strided_slice %14 {offsets = [0, 0, 16], sizes = [1, 16, 8], strides = [1, 1, 1]} : vector<1x16x32xf32> to vector<1x16x8xf32>
    %63 = vector.extract_strided_slice %17 {offsets = [0, 0, 16], sizes = [1, 16, 8], strides = [1, 1, 1]} : vector<1x16x32xf32> to vector<1x16x8xf32>
    "tpu.trace_start"() <{level = 10 : i32, message = "bqd,bkd->bqk"}> : () -> ()
    %cst_32 = arith.constant dense<0.000000e+00> : vector<1x16x16xf32>
    %64 = tpu.matmul %61, %62, %cst_32 {dimension_numbers = #tpu.dot_dimension_numbers<[2], [2], [1], [1], [0, 0, 0, 1, 1, 1], [0], [0]>} : vector<1x16x8xf32>, vector<1x16x8xf32>, vector<1x16x16xf32> -> vector<1x16x16xf32>
    "tpu.trace_stop"() : () -> ()
    %cst_33 = arith.constant 0.353553385 : f32
    %65 = vector.broadcast %cst_33 : f32 to vector<1x16x16xf32>
    %66 = arith.mulf %64, %65 : vector<1x16x16xf32>
    %cst_34 = arith.constant dense<0xFF800000> : vector<1x16xf32>
    %67 = vector.multi_reduction <maximumf>, %66, %cst_34 [2] : vector<1x16x16xf32> to vector<1x16xf32>
    %68 = vector.shape_cast %67 : vector<1x16xf32> to vector<1x16x1xf32>
    %69 = vector.broadcast %68 : vector<1x16x1xf32> to vector<1x16x16xf32>
    %70 = arith.subf %66, %69 : vector<1x16x16xf32>
    %71 = math.exp %70 : vector<1x16x16xf32>
    %cst_35 = arith.constant dense<0.000000e+00> : vector<1x16xf32>
    %72 = vector.multi_reduction <add>, %71, %cst_35 [2] : vector<1x16x16xf32> to vector<1x16xf32>
    %73 = vector.shape_cast %72 : vector<1x16xf32> to vector<1x16x1xf32>
    %74 = tpu.reciprocal %73 : vector<1x16x1xf32> -> vector<1x16x1xf32>
    %75 = vector.broadcast %74 : vector<1x16x1xf32> to vector<1x16x16xf32>
    %76 = arith.mulf %71, %75 : vector<1x16x16xf32>
    %c0_36 = arith.constant 0 : index
    %c2 = arith.constant 2 : index
    %c0_37 = arith.constant 0 : index
    %c0_38 = arith.constant 0 : index
    %77 = vector.load %arg15[%c0_36, %c2, %c0_37, %c0_38] : memref<1x4x16x16xf32, #tpu.memory_space<vmem>>, vector<1x1x16x16xf32>
    %78 = vector.shape_cast %77 : vector<1x1x16x16xf32> to vector<1x16x16xf32>
    %79 = vector.shape_cast %76 : vector<1x16x16xf32> to vector<1x1x16x16xf32>
    tpu.vector_store %arg15[%c0_36, %c2, %c0_37, %c0_38], %79 {strides = array<i32>} : memref<1x4x16x16xf32, #tpu.memory_space<vmem>>, vector<1x1x16x16xf32>,
    "tpu.trace_start"() <{level = 10 : i32, message = "bqk,bkd->bqd"}> : () -> ()
    %cst_39 = arith.constant dense<0.000000e+00> : vector<1x16x8xf32>
    %80 = tpu.matmul %76, %63, %cst_39 {dimension_numbers = #tpu.dot_dimension_numbers<[2], [1], [1], [2], [0, 0, 0, 1, 1, 2], [0], [0]>} : vector<1x16x16xf32>, vector<1x16x8xf32>, vector<1x16x8xf32> -> vector<1x16x8xf32>
    "tpu.trace_stop"() : () -> ()
    %81 = vector.extract_strided_slice %11 {offsets = [0, 24], sizes = [16, 8], strides = [1, 1]} : vector<16x32xf32> to vector<16x8xf32>
    %82 = vector.shape_cast %81 : vector<16x8xf32> to vector<1x16x8xf32>
    %83 = vector.extract_strided_slice %14 {offsets = [0, 0, 24], sizes = [1, 16, 8], strides = [1, 1, 1]} : vector<1x16x32xf32> to vector<1x16x8xf32>
    %84 = vector.extract_strided_slice %17 {offsets = [0, 0, 24], sizes = [1, 16, 8], strides = [1, 1, 1]} : vector<1x16x32xf32> to vector<1x16x8xf32>
    "tpu.trace_start"() <{level = 10 : i32, message = "bqd,bkd->bqk"}> : () -> ()
    %cst_40 = arith.constant dense<0.000000e+00> : vector<1x16x16xf32>
    %85 = tpu.matmul %82, %83, %cst_40 {dimension_numbers = #tpu.dot_dimension_numbers<[2], [2], [1], [1], [0, 0, 0, 1, 1, 1], [0], [0]>} : vector<1x16x8xf32>, vector<1x16x8xf32>, vector<1x16x16xf32> -> vector<1x16x16xf32>
    "tpu.trace_stop"() : () -> ()
    %cst_41 = arith.constant 0.353553385 : f32
    %86 = vector.broadcast %cst_41 : f32 to vector<1x16x16xf32>
    %87 = arith.mulf %85, %86 : vector<1x16x16xf32>
    %cst_42 = arith.constant dense<0xFF800000> : vector<1x16xf32>
    %88 = vector.multi_reduction <maximumf>, %87, %cst_42 [2] : vector<1x16x16xf32> to vector<1x16xf32>
    %89 = vector.shape_cast %88 : vector<1x16xf32> to vector<1x16x1xf32>
    %90 = vector.broadcast %89 : vector<1x16x1xf32> to vector<1x16x16xf32>
    %91 = arith.subf %87, %90 : vector<1x16x16xf32>
    %92 = math.exp %91 : vector<1x16x16xf32>
    %cst_43 = arith.constant dense<0.000000e+00> : vector<1x16xf32>
    %93 = vector.multi_reduction <add>, %92, %cst_43 [2] : vector<1x16x16xf32> to vector<1x16xf32>
    %94 = vector.shape_cast %93 : vector<1x16xf32> to vector<1x16x1xf32>
    %95 = tpu.reciprocal %94 : vector<1x16x1xf32> -> vector<1x16x1xf32>
    %96 = vector.broadcast %95 : vector<1x16x1xf32> to vector<1x16x16xf32>
    %97 = arith.mulf %92, %96 : vector<1x16x16xf32>
    %c0_44 = arith.constant 0 : index
    %c3 = arith.constant 3 : index
    %c0_45 = arith.constant 0 : index
    %c0_46 = arith.constant 0 : index
    %98 = vector.load %arg15[%c0_44, %c3, %c0_45, %c0_46] : memref<1x4x16x16xf32, #tpu.memory_space<vmem>>, vector<1x1x16x16xf32>
    %99 = vector.shape_cast %98 : vector<1x1x16x16xf32> to vector<1x16x16xf32>
    %100 = vector.shape_cast %97 : vector<1x16x16xf32> to vector<1x1x16x16xf32>
    tpu.vector_store %arg15[%c0_44, %c3, %c0_45, %c0_46], %100 {strides = array<i32>} : memref<1x4x16x16xf32, #tpu.memory_space<vmem>>, vector<1x1x16x16xf32>,
    "tpu.trace_start"() <{level = 10 : i32, message = "bqk,bkd->bqd"}> : () -> ()
    %cst_47 = arith.constant dense<0.000000e+00> : vector<1x16x8xf32>
    %101 = tpu.matmul %97, %84, %cst_47 {dimension_numbers = #tpu.dot_dimension_numbers<[2], [1], [1], [2], [0, 0, 0, 1, 1, 2], [0], [0]>} : vector<1x16x16xf32>, vector<1x16x8xf32>, vector<1x16x8xf32> -> vector<1x16x8xf32>
    "tpu.trace_stop"() : () -> ()
    %102 = tpu.concatenate %38, %59, %80, %101 in 2 : vector<1x16x8xf32>, vector<1x16x8xf32>, vector<1x16x8xf32>, vector<1x16x8xf32> -> vector<1x16x32xf32>
    %103 = vector.shape_cast %102 : vector<1x16x32xf32> to vector<16x32xf32>
    %c0_i32_48 = arith.constant 0 : i32
    %104 = arith.cmpi eq, %arg2, %c0_i32_48 : i32
    %105 = arith.extui %104 : i1 to i32
    %c0_i32_49 = arith.constant 0 : i32
    %106 = arith.cmpi ne, %105, %c0_i32_49 : i32
    scf.if %106 {
      %cst_60 = arith.constant 0.000000e+00 : f32
      %116 = vector.broadcast %cst_60 : f32 to vector<16x32xf32>
      %c0_61 = arith.constant 0 : index
      %c0_62 = arith.constant 0 : index
      %117 = vector.load %arg18[%c0_61, %c0_62] : memref<16x32xf32, #tpu.memory_space<vmem>>, vector<16x32xf32>
      tpu.vector_store %arg18[%c0_61, %c0_62], %116 {strides = array<i32>} : memref<16x32xf32, #tpu.memory_space<vmem>>, vector<16x32xf32>,
    } else {
    }
    %c0_50 = arith.constant 0 : index
    %c0_51 = arith.constant 0 : index
    %107 = vector.load %arg18[%c0_50, %c0_51] : memref<16x32xf32, #tpu.memory_space<vmem>>, vector<16x32xf32>
    %c0_52 = arith.constant 0 : index
    %c0_53 = arith.constant 0 : index
    %c0_54 = arith.constant 0 : index
    %108 = vector.load %arg12[%c0_52, %c0_53, %c0_54] : memref<1x32x32xf32, #tpu.memory_space<vmem>>, vector<1x32x32xf32>
    %109 = vector.shape_cast %108 : vector<1x32x32xf32> to vector<32x32xf32>
    %cst_55 = arith.constant dense<0.000000e+00> : vector<16x32xf32>
    %110 = tpu.matmul %103, %109, %cst_55 {dimension_numbers = #tpu.dot_dimension_numbers<[1], [0], [0], [1], [0, 0, 1, 1], [], []>} : vector<16x32xf32>, vector<32x32xf32>, vector<16x32xf32> -> vector<16x32xf32>
    %111 = arith.addf %107, %110 : vector<16x32xf32>
    %c0_56 = arith.constant 0 : index
    %c0_57 = arith.constant 0 : index
    %112 = vector.load %arg18[%c0_56, %c0_57] : memref<16x32xf32, #tpu.memory_space<vmem>>, vector<16x32xf32>
    tpu.vector_store %arg18[%c0_56, %c0_57], %111 {strides = array<i32>} : memref<16x32xf32, #tpu.memory_space<vmem>>, vector<16x32xf32>,
    %c0_i32_58 = arith.constant 0 : i32
    %113 = arith.cmpi eq, %arg2, %c0_i32_58 : i32
    %114 = arith.extui %113 : i1 to i32
    %c0_i32_59 = arith.constant 0 : i32
    %115 = arith.cmpi ne, %114, %c0_i32_59 : i32
    scf.if %115 {
      %c0_60 = arith.constant 0 : index
      %c0_61 = arith.constant 0 : index
      %116 = vector.load %arg18[%c0_60, %c0_61] : memref<16x32xf32, #tpu.memory_space<vmem>>, vector<16x32xf32>
      %c0_62 = arith.constant 0 : index
      %c0_63 = arith.constant 0 : index
      %117 = vector.load %arg13[%c0_62, %c0_63] : memref<1x32xf32, #tpu.memory_space<vmem>>, vector<1x32xf32>
      %118 = vector.broadcast %117 : vector<1x32xf32> to vector<16x32xf32>
      %119 = arith.addf %116, %118 : vector<16x32xf32>
      %120 = vector.shape_cast %119 : vector<16x32xf32> to vector<1x16x32xf32>
      %c0_64 = arith.constant 0 : index
      %c0_65 = arith.constant 0 : index
      %c0_66 = arith.constant 0 : index
      %121 = vector.load %arg14[%c0_64, %c0_65, %c0_66] : memref<1x16x32xf32, #tpu.memory_space<vmem>>, vector<1x16x32xf32>
      tpu.vector_store %arg14[%c0_64, %c0_65, %c0_66], %120 {strides = array<i32>} : memref<1x16x32xf32, #tpu.memory_space<vmem>>, vector<1x16x32xf32>,
    } else {
    }
    return
  }
  func.func @transform_0(%arg0: i32, %arg1: i32, %arg2: i32) -> (i32, i32, i32) {
    %c0_i32 = arith.constant 0 : i32
    %c0_i32_0 = arith.constant 0 : i32
    return %arg0, %arg1, %c0_i32 : i32, i32, i32
  }
  func.func @transform_1(%arg0: i32, %arg1: i32, %arg2: i32) -> (i32, i32, i32) {
    %c0_i32 = arith.constant 0 : i32
    %c0_i32_0 = arith.constant 0 : i32
    %c0_i32_1 = arith.constant 0 : i32
    return %arg0, %c0_i32, %c0_i32_0 : i32, i32, i32
  }
  func.func @transform_2(%arg0: i32, %arg1: i32, %arg2: i32) -> (i32, i32, i32) {
    %c0_i32 = arith.constant 0 : i32
    %c0_i32_0 = arith.constant 0 : i32
    %c0_i32_1 = arith.constant 0 : i32
    return %arg0, %c0_i32, %c0_i32_0 : i32, i32, i32
  }
  func.func @transform_3(%arg0: i32, %arg1: i32, %arg2: i32) -> (i32, i32, i32) {
    %c0_i32 = arith.constant 0 : i32
    %c0_i32_0 = arith.constant 0 : i32
    %c0_i32_1 = arith.constant 0 : i32
    return %arg2, %c0_i32, %c0_i32_0 : i32, i32, i32
  }
  func.func @transform_4(%arg0: i32, %arg1: i32, %arg2: i32) -> (i32, i32, i32) {
    %c0_i32 = arith.constant 0 : i32
    %c0_i32_0 = arith.constant 0 : i32
    %c0_i32_1 = arith.constant 0 : i32
    return %arg2, %c0_i32, %c0_i32_0 : i32, i32, i32
  }
  func.func @transform_5(%arg0: i32, %arg1: i32, %arg2: i32) -> (i32, i32, i32) {
    %c0_i32 = arith.constant 0 : i32
    %c0_i32_0 = arith.constant 0 : i32
    %c0_i32_1 = arith.constant 0 : i32
    return %arg2, %c0_i32, %c0_i32_0 : i32, i32, i32
  }
  func.func @transform_6(%arg0: i32, %arg1: i32, %arg2: i32) -> (i32, i32, i32) {
    %c0_i32 = arith.constant 0 : i32
    %c0_i32_0 = arith.constant 0 : i32
    %c0_i32_1 = arith.constant 0 : i32
    return %arg2, %c0_i32, %c0_i32_0 : i32, i32, i32
  }
  func.func @transform_7(%arg0: i32, %arg1: i32, %arg2: i32) -> (i32, i32, i32) {
    %c0_i32 = arith.constant 0 : i32
    %c0_i32_0 = arith.constant 0 : i32
    %c0_i32_1 = arith.constant 0 : i32
    return %arg2, %c0_i32, %c0_i32_0 : i32, i32, i32
  }
  func.func @transform_8(%arg0: i32, %arg1: i32, %arg2: i32) -> (i32, i32, i32) {
    %c0_i32 = arith.constant 0 : i32
    %c0_i32_0 = arith.constant 0 : i32
    %c0_i32_1 = arith.constant 0 : i32
    return %arg2, %c0_i32, %c0_i32_0 : i32, i32, i32
  }
  func.func @transform_9(%arg0: i32, %arg1: i32, %arg2: i32) -> (i32, i32, i32) {
    %c0_i32 = arith.constant 0 : i32
    %c0_i32_0 = arith.constant 0 : i32
    %c0_i32_1 = arith.constant 0 : i32
    return %arg2, %c0_i32, %c0_i32_0 : i32, i32, i32
  }
  func.func @transform_10(%arg0: i32, %arg1: i32, %arg2: i32) -> (i32, i32) {
    %c0_i32 = arith.constant 0 : i32
    %c0_i32_0 = arith.constant 0 : i32
    %c0_i32_1 = arith.constant 0 : i32
    return %c0_i32, %c0_i32_0 : i32, i32
  }
  func.func @transform_11(%arg0: i32, %arg1: i32, %arg2: i32) -> (i32, i32, i32) {
    %c0_i32 = arith.constant 0 : i32
    %c0_i32_0 = arith.constant 0 : i32
    return %arg0, %arg1, %c0_i32 : i32, i32, i32
  }
  func.func @transform_12(%arg0: i32, %arg1: i32, %arg2: i32) -> (i32, i32, i32, i32) {
    %c0_i32 = arith.constant 0 : i32
    %c0_i32_0 = arith.constant 0 : i32
    return %arg0, %arg2, %arg1, %c0_i32 : i32, i32, i32, i32
  }
}

</mosaic_0001>

<bundles_post_ra>
// kernel: tpu_custom_call.1
= control target key start
LH: loop header
LB: loop body
LE: loop exit
PB: predicated region body
PF: predicated region fallthrough
CT: control target
= control target key end

     0   :  { %s2847_s0 = inlined_call_operand.hbm [shape: f32[2,16,32], index: 0, kind: input, shape index: {}]   ;;  %s2848_s1 = inlined_call_operand.hbm [shape: f32[2,16,32], index: 1, kind: input, shape index: {}]   ;;  %s2849_s2 = inlined_call_operand.hbm [shape: f32[2,16,32], index: 2, kind: input, shape index: {}]   ;;  %s2850_s3 = inlined_call_operand.hbm [shape: f32[1,32,32], index: 3, kind: input, shape index: {}]   ;;  %s2851_s4 = inlined_call_operand.vmem [shape: f32[1,1,32], index: 4, kind: input, shape index: {}]   ;;  %s2852_s5 = inlined_call_operand.hbm [shape: f32[1,32,32], index: 5, kind: input, shape index: {}]   ;;  %s2853_s6 = inlined_call_operand.vmem [shape: f32[1,1,32], index: 6, kind: input, shape index: {}]   ;;  %s2854_s7 = inlined_call_operand.hbm [shape: f32[1,32,32], index: 7, kind: input, shape index: {}]   ;;  %s2855_s8 = inlined_call_operand.vmem [shape: f32[1,1,32], index: 8, kind: input, shape index: {}]   ;;  %s2856_s9 = inlined_call_operand.hbm [shape: f32[1,32,32], index: 9, kind: input, shape index: {}]   ;;  %s2857_s10 = inlined_call_operand.vmem [shape: f32[1,32], index: 10, kind: input, shape index: {}]   ;;  %s2858_s11 = inlined_call_operand.hbm [shape: f32[2,16,32], index: 11, kind: output, shape index: {0}]   ;;  %s2859_s12 = inlined_call_operand.hbm [shape: f32[2,4,16,16], index: 12, kind: output, shape index: {1}]  }
   0x1   :  { %2875 = sst [smem:[#allocation33_spill]] %s2847_s0 }
   0x2   :  { %2876 = sst [smem:[#allocation34_spill]] %s2848_s1 }
   0x3   :  { %2877 = sst [smem:[#allocation35_spill]] %s2850_s3 }
   0x4   :  { %2878 = sst [smem:[#allocation36_spill]] %s2852_s5 }
   0x5   :  { %2879 = sst [smem:[#allocation37_spill]] %s2854_s7 }
   0x6   :  { %2880 = sst [smem:[#allocation38_spill]] %s2857_s10 }
   0x7   :  { %2881 = sst [smem:[#allocation39_spill]] %s2858_s11 }
   0x8   :  { %2882 = sst [smem:[#allocation40_spill]] %s2859_s12 }
   0x9   :  { %18 = vsyncpa [#allocation6], 0 }
   0xa   :  { %20 = vsyncpa [#allocation6 + $0x1], 0 }
   0xb   :  { %21 = vsyncpa [#allocation9], 0 }
   0xc   :  { %23 = vsyncpa [#allocation9 + $0x1], 0 }
   0xd   :  { %24 = vsyncpa [#allocation12], 0 }
   0xe   :  { %25 = vsyncpa [#allocation15], 0 }
   0xf   :  { %26 = vsyncpa [#allocation7], 0 }
  0x10   :  { %28 = vsyncpa [#allocation7 + $0x1], 0 }
  0x11   :  { %29 = vsyncpa [#allocation19], 0 }
  0x12   :  { %31 = vsyncpa [#allocation19 + $0x1], 0  ;;  %s2409_s21 = smov 0   ;;  %s2411_s22 = smov 0  }
  0x13   :  { %s2413_s23 = smov 0   ;;  %s2415_s24 = smov 0  }
  0x14   :  { %s2417_s25 = smov 0   ;;  %s2419_s26 = smov 0  }
  0x15 LB: > { %2883 = sst [smem:[#allocation26_spill]] %s2308_s21  ;;  %s2440_s27 = sadd.s32 4294967295, %s2328_s26   ;;  %s2328_s26 = sphi %s2419_s26, %s37_s26   ;;  %s2324_s25 = sphi %s2417_s25, %s2917_s25   ;;  %s2320_s24 = sphi %s2415_s24, %s2916_s24   ;;  %s2316_s23 = sphi %s2413_s23, %s2920_s23   ;;  %s2312_s22 = sphi %s2411_s22, %s2919_s22   ;;  %s2308_s21 = sphi %s2409_s21, %s2918_s21  }
  0x16   : > { %2884 = sst [smem:[#allocation27_spill]] %s2324_s25  ;;  %s1733_s28 = sadd.s32 4294967294, %s2328_s26  }
  0x17   : > { %2885 = sst [smem:[#allocation28_spill]] %s2328_s26  ;;  %p78_p0 = scmp.ne.s32.totalorder %s2312_s22, %s2308_s21 }
  0x18   : > { %p79_p1 = scmp.eq.s32.totalorder %s2440_s27, 0  ;;  %p359_p2 = scmp.eq.s32.totalorder %s2440_s27, 1 }
  0x19   : > { %p365_p3 = scmp.eq.s32.totalorder %s1733_s28, 1  ;;  %p1734_p5 = scmp.ge.s32.totalorder %s2328_s26, 1 }
  0x1a   : > { %p2449_p4 = por %p79_p1, %p78_p0  ;;  %p402_p7 = scmp.lt.s32.totalorder %s2328_s26, 3 }
  0x1b   : > { %p2454_p6 = por %p365_p3, %p78_p0  ;;  %s2889_s3 = sld [smem:[#allocation35_spill]] }
  0x1c   : > { %p2462_p8 = pnand %p1734_p5, %p402_p7  ;;  %s2330_s17 = smov [#allocation11]  }
  0x1d   : > { %s2887_s30 = scalar_select %p2454_p6, 1, 0 }
  0x1e   : > { %p1839_p9 = pneg %p2462_p8  ;;  %s418_s18 = sshll.u32 %s2330_s17, 4  ;;  %s419_s18 = int_to_ptr.vmem [resolvable:$true] %s418_s18 }
  0x1f   : > { %2888 = sst [smem:[#allocation29_spill]] %s2887_s30  ;;  %s2861_s14 = smov 128  }
  0x20   : > { %p2470_p10 = pnand %p1839_p9, %p79_p1  ;;  %s2892_s7 = sld [smem:[#allocation37_spill]] }
  0x21   : > { %s416_s15 = sshll.u32 %s2889_s3, 4  ;;  %s2863_s17 = smov 8   ;;  %s417_s15 = int_to_ptr.hbm [resolvable:$true] %s416_s15 }
  0x22   : > { %1842 = dma.hbm_to_vmem [thread:$0]  (!%p2470_p10), %s417_s15, 512, %s419_s18, [#allocation12], %s2861_s14, %s2861_s14, %s2863_s17  }
  0x23   : > { %s2333_s3 = smov [#allocation14]   ;;  %s56_s20 = sadd.s32 1, %s2324_s25 }
  0x24   : > { %s464_s30 = sshll.u32 %s2333_s3, 4  ;;  %s65_s28 = sadd.s32 1, %s2316_s23  ;;  %s465_s30 = int_to_ptr.vmem [resolvable:$true] %s464_s30 }
  0x25   : > { %p58_p12 = scmp.ge.s32.totalorder %s56_s20, 2  ;;  %p72_p13 = scmp.ne.s32.totalorder %s2316_s23, %s2312_s22 }
  0x26   : > { %s462_s13 = sshll.u32 %s2892_s7, 4  ;;  %p73_p0 = scmp.eq.s32.totalorder %s2328_s26, 0  ;;  %s463_s13 = int_to_ptr.hbm [resolvable:$true] %s462_s13 }
  0x27   : > { %1848 = dma.hbm_to_vmem [thread:$0]  (!%p2470_p10), %s463_s13, 512, %s465_s30, [#allocation15], %s2861_s14, %s2861_s14, %s2863_s17  }
  0x28   : > { %p1873_p3 = scmp.lt.s32.totalorder %s2328_s26, 2  ;;  %s2922_s20 = smov (%p58_p12, %s56_s20), 0 }
  0x29   : > { %2893 = sst [smem:[#allocation30_spill]] %s2922_s20  ;;  %p74_p5 = por %p73_p0, %p72_p13 }
  0x2a   : > { %p2498_p7 = por %p359_p2, %p72_p13  ;;  %s60_s15 = ssub.s32 %s2324_s25, %s2922_s20 }
  0x2b   : > { %s2868_s18 = sand.u32 1, %s2316_s23   ;;  %p63_p9 = scmp.eq.s32.totalorder %s60_s15, 0 }
  0x2c   : > { %s2894_s3 = scalar_select %p2498_p7, 1, 0 }
  0x2d   : > { %s2507_s30 = sshll.u32 %s2868_s18, 4  ;;  %s2510_s13 = sshll.u32 %s2324_s25, 4 }
  0x2e   : > { %2895 = sst [smem:[#allocation31_spill]] %s2894_s3  ;;  %p2512_p11 = pnand %p1873_p3, %p74_p5 }
  0x2f   : > { %s2517_s17 = scalar_select %p63_p9, %s2316_s23, %s65_s28  }
  0x30   : > { %s528_s7 = sand.u32 1, %s2328_s26   ;;  %s2898_s1 = sld [smem:[#allocation34_spill]] }
  0x31   : > { %2897 = sst [smem:[#allocation32_spill]] %s2517_s17  ;;  %s532_s20 = scalar_lea.vmem [#allocation8], %s2507_s30 }
  0x32   : > { %s540_s18 = sshll.u32 %s532_s20, 4  ;;  %s2899_s5 = sld [smem:[#allocation36_spill]]  ;;  %s541_s18 = int_to_ptr.vmem [resolvable:$true] %s540_s18 }
  0x33   : > { %s2528_s28 = scalar_lea.sflag [#allocation9], %s528_s7  ;;  %s2900_s17 = smov 8  }
  0x34   : > { %s2901_s26 = smov 128   ;;  %s2334_s11 = smov [#allocation13]  }
  0x35   : > { %s441_s21 = sshll.u32 %s2334_s11, 4  ;;  %s2335_s7 = smov [#allocation16]   ;;  %s442_s21 = int_to_ptr.vmem [resolvable:$true] %s441_s21 }
  0x36   : > { %s537_s15 = scalar_lea.hbm %s2898_s1, %s2510_s13  ;;  %s485_s1 = sshll.u32 %s2856_s9, 4  ;;  %s486_s1 = int_to_ptr.hbm [resolvable:$true] %s485_s1 }
  0x37   : > { %s538_s10 = sshll.u32 %s537_s15, 4  ;;  %s2902_s0 = sld [smem:[#allocation33_spill]]  ;;  %s539_s10 = int_to_ptr.hbm [resolvable:$true] %s538_s10 }
  0x38   : > { %s439_s3 = sshll.u32 %s2899_s5, 4  ;;  %s508_s20 = scalar_lea.vmem [#allocation5], %s2507_s30  ;;  %s440_s3 = int_to_ptr.hbm [resolvable:$true] %s439_s3 }
  0x39   : > { %1858 = dma.hbm_to_vmem [thread:$0]  (!%p2512_p11), %s539_s10, 256, %s541_s18, %s2528_s28, %s2901_s26, %s2901_s26, %s2900_s17  }
  0x3a   : > { %1845 = dma.hbm_to_vmem [thread:$0]  (!%p2470_p10), %s440_s3, 512, %s442_s21, [#allocation12], %s2901_s26, %s2901_s26, %s2900_s17  }
  0x3b   : > { %s487_s10 = sshll.u32 %s2335_s7, 4  ;;  %s518_s15 = sshll.u32 %s508_s20, 4  ;;  %s488_s10 = int_to_ptr.vmem [resolvable:$true] %s487_s10  ;;  %s519_s15 = int_to_ptr.vmem [resolvable:$true] %s518_s15 }
  0x3c   : > { %1851 = dma.hbm_to_vmem [thread:$0]  (!%p2470_p10), %s486_s1, 512, %s488_s10, [#allocation15], %s2901_s26, %s2901_s26, %s2900_s17  }
  0x3d   : > { %s515_s18 = scalar_lea.hbm %s2902_s0, %s2510_s13  ;;  %s2903_s3 = sand.u32 1, %s2316_s23  }
  0x3e   : > { %s516_s11 = sshll.u32 %s515_s18, 4  ;;  %s505_s21 = scalar_lea.sflag [#allocation6], %s2903_s3  ;;  %s517_s11 = int_to_ptr.hbm [resolvable:$true] %s516_s11 }
  0x3f   : > { %1855 = dma.hbm_to_vmem [thread:$0]  (!%p2512_p11), %s517_s11, 256, %s519_s15, %s505_s21, %s2901_s26, %s2901_s26, %s2900_s17  }
  0x40   : > { %s559_s19 = scalar_lea.hbm %s2849_s2, %s2510_s13  ;;  %s554_s0 = scalar_lea.vmem [#allocation10], %s2507_s30 }
  0x41   : > { %s560_s25 = sshll.u32 %s559_s19, 4  ;;  %s562_s5 = sshll.u32 %s554_s0, 4  ;;  %s561_s25 = int_to_ptr.hbm [resolvable:$true] %s560_s25  ;;  %s563_s5 = int_to_ptr.vmem [resolvable:$true] %s562_s5 }
  0x42   : > { %1861 = dma.hbm_to_vmem [thread:$0]  (!%p2512_p11), %s561_s25, 256, %s563_s5, %s2528_s28, %s2901_s26, %s2901_s26, %s2900_s17  }
  0x43   : > { %574 = sbr.rel (%p2462_p8) target bundleno = 1207 (0x4b7), region = 64  ;;  %s2575_s1 = sand.u32 (!%p2462_p8), 1, %s2312_s22  }
  0x44   : > { %s2578_s13 = sshll.u32 (!%p2462_p8), %s2575_s1, 4  ;;  %s577_s0 = scalar_lea.sflag (!%p2462_p8), [#allocation6], %s2575_s1 }
  0x45   : > { %s580_s30 = scalar_lea.vmem (!%p2462_p8), [#allocation5], %s2578_s13 }
  0x48   : > { %2283 = dma.done.wait (%p2449_p4), %s577_s0, 256  }
  0x49   : > { %2285 = vsyncadd (%p2449_p4), %s577_s0, 4294967040  ;;  %s586_s5 = sand.u32 1, %s2440_s27   ;;  %s590_s16 = scalar_lea.vmem [#allocation8], %s2578_s13 }
  0x4a   : > { %s587_s26 = scalar_lea.sflag [#allocation9], %s586_s5 }
  0x4b   : > { %2287 = dma.done.wait (%p2449_p4), %s587_s26, 512  }
  0x4c   : > { %2289 = vsyncadd (%p2449_p4), %s587_s26, 4294966784  ;;  %s600_s14 = scalar_lea.vmem [#allocation10], %s2578_s13 }
  0x4d   : > { %2291 = dma.done.wait (%p79_p1), [#allocation12], 1024  }
  0x4e   : > { %2293 = vsyncadd (%p79_p1), [#allocation12], 4294966272 }
  0x4f   : > { %2295 = dma.done.wait (%p79_p1), [#allocation15], 1024  }
  0x50   : > { %2297 = vsyncadd (%p79_p1), [#allocation15], 4294966272  ;;  %v710_v0 = vld [vmem:[#allocation13 + $0x18] sm:$0xff]  ;;  %v709_v2 = vld [vmem:[#allocation13 + $0x10] sm:$0xff]  ;;  %vm715_vm0 = vcmask 261120   ;;  %s2336_s10 = smov 120  }
  0x51   : > { %v794_v1 = vld [vmem:[#allocation11 + $0x18] sm:$0xff]  ;;  %734 = vmatpush.msra.mxu0 %v710_v0  ;;  %v793_v3 = vld [vmem:[#allocation11 + $0x10] sm:$0xff]  ;;  %v708_v4 = vld [vmem:[#allocation13 + $0x8] sm:$0xff]  ;;  %vm836_vm1 = vcmask 64512   ;;  %s2337_s18 = smov 112   ;;  %s2338_s11 = smov 104  }
  0x52   : > { %818 = vmatpush.msra.mxu2 %v794_v1  ;;  %v792_v5 = vld [vmem:[#allocation11 + $0x8] sm:$0xff]  ;;  %v707_v6 = vld [vmem:[#allocation13] sm:$0xff]  ;;  %v1956_v12 = vld [vmem:[%s2853_s6] ss:$0 sm:$0xff]  ;;  %vm874_vm2 = vcmask 130048   ;;  %s1761_s3 = sshll.u32 %s2575_s1, 6 }
  0x53   : > { %735 = vmatpush.msra.mxu0 %v709_v2  ;;  %v791_v7 = vld [vmem:[#allocation11] sm:$0xff]  ;;  %v704_v10 = vld [vmem:[%s590_s16 + $0x8] sm:$0xff]  ;;  %v1957_v15 = vld [vmem:[%s2851_s4] ss:$0 sm:$0xff]  ;;  %s2700_s21 = scalar_lea.vmem [#allocation18], %s1761_s3  ;;  %s2339_s7 = smov 8  }
  0x54   : > { %819 = vmatpush.msra.mxu2 %v793_v3  ;;  %v703_v8 = vld [vmem:[%s590_s16] sm:$0xff]  ;;  %v790_v11 = vld [vmem:[%s580_s30 + $0x8] sm:$0xff]  ;;  %s2340_s12 = smov 16   ;;  %s2341_s19 = smov 24  }
  0x55   : > { %736 = vmatpush.msra.mxu0 %v708_v4  ;;  %v789_v9 = vld [vmem:[%s580_s30] sm:$0xff]  ;;  %v748_v24 = vld [vmem:[#allocation14 + $0x18] sm:$0xff]  ;;  %v746_v26 = vld [vmem:[#allocation14 + $0x8] sm:$0xff]  ;;  %s1812_s0 = sshll.u32 %s2320_s24, 6  ;;  %s2907_s26 = sld [smem:[#allocation40_spill]] }
  0x56   : > { %820 = vmatpush.msra.mxu2 %v792_v5  ;;  %v747_v25 = vld [vmem:[#allocation14 + $0x10] sm:$0xff]  ;;  %771 = vmatpush.msra.mxu1 %v748_v24  ;;  %v745_v27 = vld [vmem:[#allocation14] sm:$0xff]  ;;  %v706_v29 = vld [vmem:[%s600_s14 + $0x8] sm:$0xff]  ;;  %s1468_s27 = sshll.u32 %s2700_s21, 4  ;;  %s1432_s17 = scalar_lea.sflag [#allocation19], %s2575_s1  ;;  %s1469_s27 = int_to_ptr.vmem [resolvable:$true] %s1468_s27 }
  0x57   : > { %737 = vmatpush.msra.mxu0 %v707_v6  ;;  %v705_v28 = vld [vmem:[%s600_s14] sm:$0xff] }
  0x58   : > { %821 = vmatpush.msra.mxu2 %v791_v7  ;;  %1762 = vmatmul.msk.f32.vlgmr.msra.gmra.mxu0 %vm715_vm0, %v703_v8  ;;  %v1958_v45 = vld [vmem:[%s2855_s8] ss:$0 sm:$0xff] }
  0x59   : > { %1766 = vmatmul.msk.f32.vlgmr.msra.gmra.mxu2 %vm715_vm0, %v789_v9  ;;  %772 = vmatpush.msra.mxu1 %v747_v25 }
  0x5b   : > { %773 = vmatpush.msra.mxu1 %v746_v26  ;;  %s2908_s16 = smov %s2907_s26  ;;  %s1467_s14 = scalar_lea.hbm %s2907_s26, %s1812_s0 }
  0x5c   : > { %s1470_s29 = sshll.u32 %s1467_s14, 4  ;;  %s2222_s20 = scalar_lea.hbm %s2908_s16, 128  ;;  %s1471_s29 = int_to_ptr.hbm [resolvable:$true] %s1470_s29 }
  0x5d   : > { %774 = vmatpush.msra.mxu1 %v745_v27  ;;  %s2216_s28 = sshra.s32 %s1471_s29, 4  ;;  %s2217_s28 = int_to_ptr.hbm [resolvable:$true] %s2216_s28 }
  0x5e   : > { %1764 = vmatmul.msk.f32.vlgmr.msra.gmra.mxu1 %vm715_vm0, %v705_v28  ;;  %p2223_p8 = scmp.lt.s32.totalorder %s2217_s28, %s2908_s16 }
  0x60   : > { %1763 = vmatmul.msk.f32.gmra.mxu0 %vm715_vm0, %v704_v10 }
  0x61   : > { %1767 = vmatmul.msk.f32.gmra.mxu2 %vm715_vm0, %v790_v11 }
  0x66   : > { %1765 = vmatmul.msk.f32.gmra.mxu1 %vm715_vm0, %v706_v29 }
  0xd5   : > { %v739_v13 = vpop.f32.mrf.mxu0 }
  0xd6   : > { %v740_v14 = vadd.f32 %v1956_v12, %v739_v13 }
  0xd8   : > { %784 = vst.msk [vmem:[#allocation2] sm:$0xff] %vm715_vm0, %v740_v14 }
  0xdb   : > { %v776_v46 = vpop.f32.mrf.mxu1 }
  0xdc   : > { %v823_v16 = vpop.f32.mrf.mxu2  ;;  %v777_v47 = vadd.f32 %v1958_v45, %v776_v46 }
  0xdd   : > { %v824_v17 = vadd.f32 %v1957_v15, %v823_v16  ;;  %v742_v18 = vpop.f32.mrf.mxu0 }
  0xde   : > { %v743_v19 = vadd.f32 %v1956_v12, %v742_v18  ;;  %787 = vst.msk [vmem:[#allocation3] sm:$0xff] %vm715_vm0, %v777_v47 }
  0xdf   : > { %954 = vrot.lane.b32.xlu1 %v824_v17, %s2336_s10  ;;  %v831_v23 = vld [vmem:[#allocation2] sm:$0xff] }
  0xe0   : > { %785 = vst.msk [vmem:[#allocation2 + $0x8] sm:$0xff] %vm715_vm0, %v743_v19 }
  0xe3   : > { %v779_v48 = vpop.f32.mrf.mxu1 }
  0xe4   : > { %v826_v20 = vpop.f32.mrf.mxu2  ;;  %v780_v49 = vadd.f32 %v1958_v45, %v779_v48 }
  0xe5   : > { %v827_v21 = vadd.f32 %v1957_v15, %v826_v20  ;;  %v834_v51 = vld [vmem:[#allocation3] sm:$0xff] }
  0xe6   : > { %788 = vst.msk [vmem:[#allocation3 + $0x8] sm:$0xff] %vm715_vm0, %v780_v49 }
  0xe7   : > { %956 = vrot.lane.b32.xlu1 %v827_v21, %s2336_s10  ;;  %v832_v22 = vld [vmem:[#allocation2 + $0x8] sm:$0xff] }
  0xe8   : > { %1089 = vrot.lane.b32.xlu2 %v832_v22, %s2337_s18  ;;  %960 = vrot.lane.b32.xlu0 %v832_v22, %s2336_s10 }
  0xe9   : > { %1768 = vmatpush.xpose.msk.msra.mxu3 %vm836_vm1, %v832_v22 }
  0xed   : > { %1769 = vmatpush.xpose.msk.msra.mxu3 %vm836_vm1, %v831_v23  ;;  %v835_v50 = vld [vmem:[#allocation3 + $0x8] sm:$0xff] }
  0xee   : > { %945 = vmatpush.msrb.mxu0 %v835_v50  ;;  %v2657_v52 = vpack.i.bf16 %v834_v51, %v835_v50 }
  0xef   : > { %1214 = vrot.lane.b32.xlu1 %v831_v23, %s2338_s11 }
  0xf0   : > { %1770 = vmatmul.msk.f32.vlgmr.msra.gmra.mxu3 %vm836_vm1, %v824_v17  ;;  %1216 = vrot.lane.b32.xlu2 %v832_v22, %s2338_s11 }
  0xf1   : > { %958 = vrot.lane.b32.xlu0 %v831_v23, %s2336_s10  ;;  %946 = vmatpush.msrb.mxu0 %v834_v51 }
  0xf7   : > { %1085 = vrot.lane.b32.xlu1 %v827_v21, %s2337_s18 }
  0xf8   : > { %1083 = vrot.lane.b32.xlu2 %v824_v17, %s2337_s18  ;;  %1771 = vmatmul.msk.f32.gmra.mxu3 %vm836_vm1, %v827_v21 }
  0xf9   : > { %1087 = vrot.lane.b32.xlu0 %v831_v23, %s2337_s18 }
 0x100   : > { %1212 = vrot.lane.b32.xlu2 %v827_v21, %s2338_s11 }
 0x101   : > { %1210 = vrot.lane.b32.xlu0 %v824_v17, %s2338_s11 }
 0x142   : > { %v1090_v30 = vpop.permute.xlu2 %1089 }
 0x143   : > { %1782 = vmatpush.xpose.msk.msrb.mxu3 %vm836_vm1, %v1090_v30 }
 0x14a   : > { %v1217_v35 = vpop.permute.xlu2 %1216 }
 0x151   : > { %v955_v31 = vpop.permute.xlu1 %954 }
 0x152   : > { %v1084_v38 = vpop.permute.xlu2 %1083 }
 0x159   : > { %v957_v33 = vpop.permute.xlu1 %956 }
 0x15a   : > { %v961_v32 = vpop.permute.xlu0 %960  ;;  %v1213_v44 = vpop.permute.xlu2 %1212 }
 0x15b   : > { %1774 = vmatpush.xpose.msk.msrb.mxu1 %vm836_vm1, %v961_v32 }
 0x161   : > { %v1215_v36 = vpop.permute.xlu1 %1214 }
 0x163   : > { %v959_v34 = vpop.permute.xlu0 %958 }
 0x164   : > { %1775 = vmatpush.xpose.msk.msrb.mxu1 %vm836_vm1, %v959_v34 }
 0x167   : > { %1776 = vmatmul.msk.f32.vlgmr.msrb.gmra.mxu1 %vm836_vm1, %v955_v31 }
 0x168   : > { %1790 = vmatpush.xpose.msk.msra.mxu1 %vm836_vm1, %v1217_v35 }
 0x169   : > { %v1086_v41 = vpop.permute.xlu1 %1085 }
 0x16b   : > { %v1088_v37 = vpop.permute.xlu0 %1087 }
 0x16c   : > { %1791 = vmatpush.xpose.msk.msra.mxu1 %vm836_vm1, %v1215_v36  ;;  %1783 = vmatpush.xpose.msk.msrb.mxu3 %vm836_vm1, %v1088_v37 }
 0x16f   : > { %1777 = vmatmul.msk.f32.gmra.mxu1 %vm836_vm1, %v957_v33  ;;  %1784 = vmatmul.msk.f32.vlgmr.msrb.gmra.mxu3 %vm836_vm1, %v1084_v38 }
 0x173   : > { %v866_v39 = vpop.f32.mrf.mxu3  ;;  %v1211_v42 = vpop.permute.xlu0 %1210 }
 0x174   : > { %v872_v40 = vmul.f32 0.35355338, %v866_v39 }
 0x176   : > { %v875_v43 = vsel %vm874_vm2, %v872_v40, -inf }
 0x177   : > { %1785 = vmatmul.msk.f32.gmra.mxu3 %vm836_vm1, %v1086_v41  ;;  %1792 = vmatmul.msk.f32.vlgmr.msra.gmra.mxu1 %vm836_vm1, %v1211_v42 }
 0x178   : > { %876 = vmax.xlane.f32.xlu1 %v875_v43 }
 0x17b   : > { %v869_v56 = vpop.f32.mrf.mxu3 }
 0x17c   : > { %v873_v61 = vmul.f32 0.35355338, %v869_v56 }
 0x17e   : > { %v878_v5 = vsel %vm874_vm2, %v873_v61, -inf }
 0x17f   : > { %1793 = vmatmul.msk.f32.gmra.mxu1 %vm836_vm1, %v1213_v44 }
 0x1e4   : > { %v987_v53 = vpop.f32.mrf.mxu1 }
 0x1e5   : > { %v993_v54 = vmul.f32 0.35355338, %v987_v53 }
 0x1e7   : > { %v995_v55 = vsel %vm874_vm2, %v993_v54, -inf }
 0x1e8   : > { %996 = vmax.xlane.f32.xlu0 %v995_v55 }
 0x1eb   : > { %v877_v62 = vpop.xlane.xlu1 %876 }
 0x1ec   : > { %v990_v57 = vpop.f32.mrf.mxu1  ;;  %v881_v3 = vsub.f32 %v872_v40, %v877_v62 }
 0x1ed   : > { %v994_v58 = vmul.f32 0.35355338, %v990_v57 }
 0x1ee   : > { %v883_v6 = vmul.f32 1.442695, %v881_v3 }
 0x1ef   : > { %v998_v59 = vsel %vm874_vm2, %v994_v58, -inf }
 0x1f0   : > { %999 = vmax.xlane.f32.xlu2 %v998_v59  ;;  %1960 = vpow2.f32 %v883_v6 }
 0x1f2   : > { %v1116_v60 = vpop.f32.mrf.mxu3 }
 0x1f3   : > { %v1122_v63 = vmul.f32 0.35355338, %v1116_v60 }
 0x1f4   : > { %v1243_v0 = vpop.f32.mrf.mxu1 }
 0x1f5   : > { %v1249_v1 = vmul.f32 0.35355338, %v1243_v0  ;;  %v1124_v2 = vsel %vm874_vm2, %v1122_v63, -inf }
 0x1f6   : > { %1125 = vmax.xlane.f32.xlu1 %v1124_v2  ;;  %v2666_v13 = vpop.eup %1960 }
 0x1f7   : > { %v1251_v4 = vsel %vm874_vm2, %v1249_v1, -inf  ;;  %v887_v14 = vsel %vm874_vm2, %v2666_v13, 0.0 }
 0x1f8   : > { %1252 = vmax.xlane.f32.xlu0 %v1251_v4  ;;  %879 = vmax.xlane.f32.xlu2 %v878_v5 }
 0x1fa   : > { %v1119_v7 = vpop.f32.mrf.mxu3 }
 0x1fb   : > { %v1123_v8 = vmul.f32 0.35355338, %v1119_v7 }
 0x1fc   : > { %v1246_v9 = vpop.f32.mrf.mxu1 }
 0x1fd   : > { %v1250_v10 = vmul.f32 0.35355338, %v1246_v9  ;;  %v1127_v11 = vsel %vm874_vm2, %v1123_v8, -inf }
 0x1ff   : > { %v1254_v12 = vsel %vm874_vm2, %v1250_v10, -inf }
 0x200   : > { %1128 = vmax.xlane.f32.xlu0 %v1127_v11  ;;  %1255 = vmax.xlane.f32.xlu2 %v1254_v12 }
 0x208   : > { %888 = vadd.xlane.f32.xlu2 %v887_v14 }
 0x25b   : > { %v997_v15 = vpop.xlane.xlu0 %996 }
 0x25c   : > { %v1001_v26 = vsub.f32 %v993_v54, %v997_v15 }
 0x25e   : > { %v1003_v28 = vmul.f32 1.442695, %v1001_v26 }
 0x263   : > { %v1000_v16 = vpop.xlane.xlu2 %999 }
 0x264   : > { %v1002_v17 = vsub.f32 %v994_v58, %v1000_v16 }
 0x266   : > { %v1005_v18 = vmul.f32 1.442695, %v1002_v17 }
 0x268   : > { %1962 = vpow2.f32 %v1005_v18 }
 0x269   : > { %v1126_v30 = vpop.xlane.xlu1 %1125 }
 0x26a   : > { %v1130_v35 = vsub.f32 %v1122_v63, %v1126_v30 }
 0x26b   : > { %v1253_v19 = vpop.xlane.xlu0 %1252  ;;  %v880_v20 = vpop.xlane.xlu2 %879 }
 0x26c   : > { %v1257_v21 = vsub.f32 %v1249_v1, %v1253_v19  ;;  %v882_v22 = vsub.f32 %v873_v61, %v880_v20  ;;  %v1132_v38 = vmul.f32 1.442695, %v1130_v35 }
 0x26e   : > { %v2670_v23 = vpop.eup %1962  ;;  %v1259_v24 = vmul.f32 1.442695, %v1257_v21  ;;  %v885_v25 = vmul.f32 1.442695, %v882_v22 }
 0x26f   : > { %v1010_v27 = vsel %vm874_vm2, %v2670_v23, 0.0 }
 0x270   : > { %1964 = vpow2.f32 %v1259_v24  ;;  %1011 = vadd.xlane.f32.xlu0 %v1010_v27 }
 0x271   : > { %1966 = vpow2.f32 %v885_v25 }
 0x272   : > { %1968 = vpow2.f32 %v1003_v28 }
 0x273   : > { %v1256_v29 = vpop.xlane.xlu2 %1255  ;;  %v1129_v40 = vpop.xlane.xlu0 %1128 }
 0x274   : > { %v1258_v31 = vsub.f32 %v1250_v10, %v1256_v29  ;;  %v1131_v43 = vsub.f32 %v1123_v8, %v1129_v40 }
 0x276   : > { %v2674_v32 = vpop.eup %1964  ;;  %v1261_v33 = vmul.f32 1.442695, %v1258_v31  ;;  %v1134_v47 = vmul.f32 1.442695, %v1131_v43 }
 0x277   : > { %v2676_v34 = vpop.eup %1966  ;;  %v1263_v36 = vsel %vm874_vm2, %v2674_v32, 0.0 }
 0x278   : > { %1264 = vadd.xlane.f32.xlu2 %v1263_v36  ;;  %v890_v37 = vsel %vm874_vm2, %v2676_v34, 0.0  ;;  %1970 = vpow2.f32 %v1261_v33  ;;  %v2682_v41 = vpop.eup %1968 }
 0x279   : > { %891 = vadd.xlane.f32.xlu1 %v890_v37  ;;  %v1007_v44 = vsel %vm874_vm2, %v2682_v41, 0.0 }
 0x27b   : > { %v889_v39 = vpop.xlane.xlu2 %888 }
 0x27c   : > { %1972 = vrcp.f32 %v889_v39  ;;  %v904_v51 = vand.u32 2147483648, %v889_v39  ;;  %v902_v54 = vand.u32 2147483647, %v889_v39  ;;  %vm898_vm4 = vweird.f32 %v889_v39 }
 0x27d   : > { %1974 = vpow2.f32 %v1132_v38 }
 0x27e   : > { %v2684_v42 = vpop.eup %1970  ;;  %1976 = vpow2.f32 %v1134_v47  ;;  %v905_v57 = vor.u32 1.1754944e-38, %v904_v51  ;;  %vm903_vm6 = vcmp.eq.f32.partialorder %v902_v54, 8.507059e+37 }
 0x27f   : > { %v1266_v45 = vsel %vm874_vm2, %v2684_v42, 0.0 }
 0x280   : > { %1267 = vadd.xlane.f32.xlu2 %v1266_v45 }
 0x281   : > { %1008 = vadd.xlane.f32.xlu1 %v1007_v44 }
 0x282   : > { %v1973_v46 = vpop.eup %1972 }
 0x283   : > { %v894_v48 = vmul.f32 %v1973_v46, %v889_v39  ;;  %v2692_v49 = vpop.eup %1974  ;;  %vm899_vm3 = vweird.f32 %v1973_v46 }
 0x284   : > { %1942 = vrot.lane.b32.xlu0 %v2657_v52, %s2336_s10  ;;  %v1136_v55 = vsel %vm874_vm2, %v2692_v49, 0.0  ;;  %vm900_vm5 = vmor %vm898_vm4, %vm899_vm3  ;;  %v2697_v60 = vpop.eup %1976  ;;  %s2218_s10 = scalar_lea.hbm %s2217_s28, 64 }
 0x285   : > { %v895_v50 = vsub.f32 1.0, %v894_v48  ;;  %v1139_v62 = vsel %vm874_vm2, %v2697_v60, 0.0  ;;  %p2219_p1 = scmp.ne.s32.totalorder %s2217_s28, %s2218_s10  ;;  %p2224_p10 = scmp.lt.s32.totalorder %s2222_s20, %s2218_s10 }
 0x287   : > { %v896_v53 = vmul.f32 %v1973_v46, %v895_v50  ;;  %p2220_p2 = pnand %p2219_p1, %p2498_p7  ;;  %p2225_p11 = por %p2224_p10, %p2223_p8 }
 0x289   : > { %v897_v56 = vadd.f32 %v1973_v46, %v896_v53  ;;  %1137 = vadd.xlane.f32.xlu1 %v1136_v55  ;;  %p2221_p4 = pneg %p2220_p2 }
 0x28b   : > { %v901_v58 = vsel %vm900_vm5, %v1973_v46, %v897_v56  ;;  %p2226_p12 = pnand %p2225_p11, %p2221_p4 }
 0x28c   : > { %v906_v59 = vsel %vm903_vm6, %v905_v57, %v901_v58 }
 0x28d   : > { %v921_v61 = vmul.f32 %v2666_v13, %v906_v59 }
 0x28f   : > { %923 = vst.msk [vmem:[%s2700_s21] sm:$0xff] %vm874_vm2, %v921_v61  ;;  %1772 = vmatmul.msk.f32.vlgmr.msrb.gmra.mxu0 %vm874_vm2, %v921_v61 }
 0x291   : > { %1140 = vadd.xlane.f32.xlu1 %v1139_v62 }
 0x298   : > { %1947 = vrot.lane.b32.xlu2 %v2657_v52, %s2338_s11 }
 0x2aa   : > { %1952 = vrot.lane.b32.xlu1 %v2657_v52, %s2337_s18 }
 0x2e3   : > { %v1012_v63 = vpop.xlane.xlu0 %1011 }
 0x2e4   : > { %1978 = vrcp.f32 %v1012_v63  ;;  %v1038_v6 = vand.u32 2147483648, %v1012_v63  ;;  %v1036_v7 = vand.u32 2147483647, %v1012_v63  ;;  %vm1032_vm8 = vweird.f32 %v1012_v63 }
 0x2e6   : > { %v1039_v11 = vor.u32 1.1754944e-38, %v1038_v6  ;;  %vm1037_vm10 = vcmp.eq.f32.partialorder %v1036_v7, 8.507059e+37 }
 0x2ea   : > { %v1979_v0 = vpop.eup %1978 }
 0x2eb   : > { %v1028_v1 = vmul.f32 %v1979_v0, %v1012_v63  ;;  %v1265_v2 = vpop.xlane.xlu2 %1264  ;;  %vm1033_vm7 = vweird.f32 %v1979_v0 }
 0x2ec   : > { %v892_v3 = vpop.xlane.xlu1 %891  ;;  %1980 = vrcp.f32 %v1265_v2  ;;  %vm1034_vm9 = vmor %vm1032_vm8, %vm1033_vm7  ;;  %v1280_v19 = vand.u32 2147483648, %v1265_v2  ;;  %v1278_v22 = vand.u32 2147483647, %v1265_v2  ;;  %vm1274_vm13 = vweird.f32 %v1265_v2 }
 0x2ed   : > { %v1029_v4 = vsub.f32 1.0, %v1028_v1  ;;  %1982 = vrcp.f32 %v892_v3  ;;  %v918_v27 = vand.u32 2147483648, %v892_v3  ;;  %vm912_vm14 = vweird.f32 %v892_v3 }
 0x2ee   : > { %v1281_v30 = vor.u32 1.1754944e-38, %v1280_v19  ;;  %v916_v33 = vand.u32 2147483647, %v892_v3  ;;  %vm1279_vm3 = vcmp.eq.f32.partialorder %v1278_v22, 8.507059e+37 }
 0x2ef   : > { %v1030_v5 = vmul.f32 %v1979_v0, %v1029_v4  ;;  %v919_v45 = vor.u32 1.1754944e-38, %v918_v27 }
 0x2f0   : > { %vm917_vm5 = vcmp.eq.f32.partialorder %v916_v33, 8.507059e+37 }
 0x2f1   : > { %v1031_v8 = vadd.f32 %v1979_v0, %v1030_v5 }
 0x2f2   : > { %v1981_v9 = vpop.eup %1980 }
 0x2f3   : > { %v1983_v10 = vpop.eup %1982  ;;  %v1270_v52 = vmul.f32 %v1981_v9, %v1265_v2  ;;  %v1035_v12 = vsel %vm1034_vm9, %v1979_v0, %v1031_v8  ;;  %v2713_v15 = vpop.xlane.xlu2 %1267  ;;  %vm1275_vm11 = vweird.f32 %v1981_v9 }
 0x2f4   : > { %v908_v13 = vmul.f32 %v1983_v10, %v892_v3  ;;  %v2711_v14 = vpop.xlane.xlu1 %1008  ;;  %v1040_v17 = vsel %vm1037_vm10, %v1039_v11, %v1035_v12  ;;  %vm913_vm12 = vweird.f32 %v1983_v10  ;;  %vm1276_vm15 = vmor %vm1274_vm13, %vm1275_vm11  ;;  %v1294_v61 = vand.u32 2147483648, %v2713_v15 }
 0x2f5   : > { %v1271_v16 = vsub.f32 1.0, %v1270_v52  ;;  %1984 = vrcp.f32 %v2711_v14  ;;  %v2718_v26 = vmul.f32 %v2670_v23, %v1040_v17  ;;  %vm2724_vm4 = vmor %vm912_vm14, %vm913_vm12  ;;  %v1022_v48 = vand.u32 2147483647, %v2711_v14 }
 0x2f6   : > { %v909_v18 = vsub.f32 1.0, %v908_v13  ;;  %1986 = vrcp.f32 %v2713_v15  ;;  %v1943_v20 = vpop.permute.xlu0 %1942  ;;  %v1024_v51 = vand.u32 2147483648, %v2711_v14  ;;  %vm1018_vm7 = vweird.f32 %v2711_v14 }
 0x2f7   : > { %v1272_v21 = vmul.f32 %v1981_v9, %v1271_v16  ;;  %v1944_v24 = vunpack.i.l.bf16 %v1943_v20  ;;  %v1945_v29 = vunpack.i.h.bf16 %v1943_v20  ;;  %1779 = vst.msk [vmem:[%s2700_s21 + $0x18] sm:$0xff] %vm874_vm2, %v2718_v26  ;;  %vm1023_vm10 = vcmp.eq.f32.partialorder %v1022_v48, 8.507059e+37 }
 0x2f8   : > { %v910_v25 = vmul.f32 %v1983_v10, %v909_v18  ;;  %vm1288_vm11 = vweird.f32 %v2713_v15  ;;  %v1295_v4 = vor.u32 1.1754944e-38, %v1294_v61 }
 0x2f9   : > { %v1273_v28 = vadd.f32 %v1981_v9, %v1272_v21  ;;  %1074 = vmatpush.msrb.mxu2 %v1944_v24 }
 0x2fa   : > { %v911_v31 = vadd.f32 %v1983_v10, %v910_v25 }
 0x2fb   : > { %v1985_v35 = vpop.eup %1984  ;;  %v1277_v36 = vsel %vm1276_vm15, %v1981_v9, %v1273_v28  ;;  %1075 = vmatpush.msrb.mxu2 %v1945_v29  ;;  %v1948_v43 = vpop.permute.xlu2 %1947 }
 0x2fc   : > { %v1987_v37 = vpop.eup %1986  ;;  %v1282_v38 = vsel %vm1279_vm3, %v1281_v30, %v1277_v36  ;;  %v1014_v39 = vmul.f32 %v1985_v35, %v2711_v14  ;;  %v1138_v40 = vpop.xlane.xlu1 %1137  ;;  %v915_v44 = vsel %vm2724_vm4, %v1983_v10, %v911_v31  ;;  %v1949_v50 = vunpack.i.l.bf16 %v1948_v43 }
 0x2fd   : > { %v1284_v46 = vmul.f32 %v1987_v37, %v2713_v15  ;;  %1988 = vrcp.f32 %v1138_v40  ;;  %v920_v54 = vsel %vm917_vm5, %v919_v45, %v915_v44  ;;  %v2735_v55 = vmul.f32 %v2674_v32, %v1282_v38  ;;  %v1379_v38 = vld [vmem:[#allocation16 + $0x18] sm:$0xff] }
 0x2fe   : > { %v1015_v47 = vsub.f32 1.0, %v1014_v39  ;;  %vm1019_vm6 = vweird.f32 %v1985_v35  ;;  %v1950_v57 = vunpack.i.h.bf16 %v1948_v43  ;;  %1328 = vmatpush.msra.mxu2 %v1949_v50  ;;  %v922_v58 = vmul.f32 %v2676_v34, %v920_v54  ;;  %v1378_v39 = vld [vmem:[#allocation16 + $0x10] sm:$0xff]  ;;  %1398 = vmatpush.msra.mxu3 %v1379_v38  ;;  %v1376_v43 = vld [vmem:[#allocation16] sm:$0xff] }
 0x2ff   : > { %v1285_v53 = vsub.f32 1.0, %v1284_v46  ;;  %1794 = vst.msk [vmem:[%s2700_s21 + $0x30] sm:$0xff] %vm874_vm2, %v2735_v55  ;;  %vm1289_vm8 = vweird.f32 %v1987_v37  ;;  %v1292_v32 = vand.u32 2147483647, %v2713_v15  ;;  %vm1020_vm9 = vmor %vm1018_vm7, %vm1019_vm6  ;;  %v1025_v34 = vor.u32 1.1754944e-38, %v1024_v51 }
 0x300   : > { %v1016_v56 = vmul.f32 %v1985_v35, %v1015_v47  ;;  %924 = vst.msk [vmem:[%s2700_s21 + $0x8] sm:$0xff] %vm874_vm2, %v922_v58  ;;  %1773 = vmatmul.msk.f32.gmra.mxu0 %vm874_vm2, %v922_v58  ;;  %1329 = vmatpush.msra.mxu2 %v1950_v57  ;;  %vm1290_vm12 = vmor %vm1288_vm11, %vm1289_vm8  ;;  %v1153_v9 = vand.u32 2147483648, %v1138_v40  ;;  %v1151_v52 = vand.u32 2147483647, %v1138_v40  ;;  %vm1147_vm15 = vweird.f32 %v1138_v40 }
 0x301   : > { %v1286_v59 = vmul.f32 %v1987_v37, %v1285_v53  ;;  %vm1293_vm13 = vcmp.eq.f32.partialorder %v1292_v32, 8.507059e+37  ;;  %1399 = vmatpush.msra.mxu3 %v1378_v39  ;;  %v2342_v44 = vmov 0.0  }
 0x302   : > { %v1017_v62 = vadd.f32 %v1985_v35, %v1016_v56  ;;  %vm1152_vm4 = vcmp.eq.f32.partialorder %v1151_v52, 8.507059e+37  ;;  %1372 = vst.msk [vmem:[#allocation4] sm:$0xff] %vm715_vm0, %v2342_v44 }
 0x303   : > { %v1989_v63 = vpop.eup %1988  ;;  %v1287_v0 = vadd.f32 %v1987_v37, %v1286_v59  ;;  %1373 = vst.msk [vmem:[#allocation4 + $0x8] sm:$0xff] %vm715_vm0, %v2342_v44 }
 0x304   : > { %v1143_v1 = vmul.f32 %v1989_v63, %v1138_v40  ;;  %v1141_v2 = vpop.xlane.xlu1 %1140  ;;  %v1021_v3 = vsel %vm1020_vm9, %v1985_v35, %v1017_v62  ;;  %vm1148_vm14 = vweird.f32 %v1989_v63  ;;  %v1377_v40 = vld [vmem:[#allocation16 + $0x8] sm:$0xff]  ;;  %vm1365_vm9 = vcmask 195584  }
 0x305   : > { %1990 = vrcp.f32 %v1141_v2  ;;  %v1026_v5 = vsel %vm1023_vm10, %v1025_v34, %v1021_v3  ;;  %v1291_v8 = vsel %vm1290_vm12, %v1987_v37, %v1287_v0  ;;  %vm1149_vm3 = vmor %vm1147_vm15, %vm1148_vm14  ;;  %v1167_v20 = vand.u32 2147483648, %v1141_v2  ;;  %1400 = vmatpush.msra.mxu3 %v1377_v40 }
 0x306   : > { %v1144_v6 = vsub.f32 1.0, %v1143_v1  ;;  %v1041_v7 = vmul.f32 %v2682_v41, %v1026_v5  ;;  %v1296_v10 = vsel %vm1293_vm13, %v1295_v4, %v1291_v8  ;;  %v1154_v41 = vor.u32 1.1754944e-38, %v1153_v9 }
 0x307   : > { %v1298_v12 = vmul.f32 %v2684_v42, %v1296_v10  ;;  %v1165_v42 = vand.u32 2147483647, %v1141_v2  ;;  %vm1161_vm6 = vweird.f32 %v1141_v2  ;;  %v1168_v24 = vor.u32 1.1754944e-38, %v1167_v20  ;;  %1401 = vmatpush.msra.mxu3 %v1376_v43 }
 0x308   : > { %v1145_v11 = vmul.f32 %v1989_v63, %v1144_v6  ;;  %1778 = vst.msk [vmem:[%s2700_s21 + $0x10] sm:$0xff] %vm874_vm2, %v1041_v7  ;;  %1780 = vmatmul.msk.f32.vlgmr.msrb.gmra.mxu2 %vm874_vm2, %v1041_v7 }
 0x309   : > { %1795 = vst.msk [vmem:[%s2700_s21 + $0x38] sm:$0xff] %vm874_vm2, %v1298_v12  ;;  %vm1166_vm8 = vcmp.eq.f32.partialorder %v1165_v42, 8.507059e+37 }
 0x30a   : > { %v1146_v13 = vadd.f32 %v1989_v63, %v1145_v11 }
 0x30b   : > { %v1991_v14 = vpop.eup %1990 }
 0x30c   : > { %v1150_v15 = vsel %vm1149_vm3, %v1989_v63, %v1146_v13  ;;  %v1157_v16 = vmul.f32 %v1991_v14, %v1141_v2  ;;  %vm1162_vm5 = vweird.f32 %v1991_v14 }
 0x30d   : > { %v1155_v17 = vsel %vm1152_vm4, %v1154_v41, %v1150_v15  ;;  %vm1163_vm7 = vmor %vm1161_vm6, %vm1162_vm5 }
 0x30e   : > { %v1158_v18 = vsub.f32 1.0, %v1157_v16  ;;  %v1170_v19 = vmul.f32 %v2692_v49, %v1155_v17 }
 0x310   : > { %v1159_v21 = vmul.f32 %v1991_v14, %v1158_v18  ;;  %1781 = vmatmul.msk.f32.gmra.mxu2 %vm874_vm2, %v2718_v26  ;;  %1786 = vst.msk [vmem:[%s2700_s21 + $0x20] sm:$0xff] %vm874_vm2, %v1170_v19 }
 0x312   : > { %v1160_v22 = vadd.f32 %v1991_v14, %v1159_v21 }
 0x314   : > { %v1164_v25 = vsel %vm1163_vm7, %v1991_v14, %v1160_v22 }
 0x315   : > { %v1169_v27 = vsel %vm1166_vm8, %v1168_v24, %v1164_v25 }
 0x316   : > { %v1171_v28 = vmul.f32 %v2697_v60, %v1169_v27  ;;  %v948_v60 = vpop.f32.mrf.mxu0 }
 0x318   : > { %1796 = vmatmul.msk.f32.vlgmr.msra.gmra.mxu2 %vm874_vm2, %v2735_v55  ;;  %1787 = vst.msk [vmem:[%s2700_s21 + $0x28] sm:$0xff] %vm874_vm2, %v1171_v28 }
 0x31c   : > { %v1953_v49 = vpop.permute.xlu1 %1952 }
 0x31d   : > { %v1954_v26 = vunpack.i.l.bf16 %v1953_v49  ;;  %v1955_v29 = vunpack.i.h.bf16 %v1953_v49 }
 0x31f   : > { %1201 = vmatpush.msra.mxu0 %v1954_v26 }
 0x320   : > { %1797 = vmatmul.msk.f32.gmra.mxu2 %vm874_vm2, %v1298_v12 }
 0x321   : > { %1202 = vmatpush.msra.mxu0 %v1955_v29 }
 0x322   : > { %1788 = vmatmul.msk.f32.vlgmr.msra.gmra.mxu0 %vm874_vm2, %v1170_v19 }
 0x32a   : > { %1789 = vmatmul.msk.f32.gmra.mxu0 %vm874_vm2, %v1171_v28 }
 0x37d   : > { %v951_v33 = vpop.f32.mrf.mxu0 }
 0x38b   : > { %v1077_v30 = vpop.f32.mrf.mxu2 }
 0x38c   : > { %1339 = vrot.lane.b32.xlu0 %v1077_v30, %s2339_s7 }
 0x393   : > { %v1080_v31 = vpop.f32.mrf.mxu2 }
 0x394   : > { %1341 = vrot.lane.b32.xlu2 %v1080_v31, %s2339_s7 }
 0x39b   : > { %v1331_v36 = vpop.f32.mrf.mxu2 }
 0x39f   : > { %v1204_v35 = vpop.f32.mrf.mxu0 }
 0x3a0   : > { %1347 = vrot.lane.b32.xlu0 %v1204_v35, %s2340_s12 }
 0x3a3   : > { %v1334_v37 = vpop.f32.mrf.mxu2 }
 0x3a7   : > { %v1207_v23 = vpop.f32.mrf.mxu0 }
 0x3a8   : > { %1349 = vrot.lane.b32.xlu1 %v1207_v23, %s2340_s12  ;;  %1355 = vrot.lane.b32.xlu0 %v1331_v36, %s2341_s19 }
 0x3b0   : > { %1357 = vrot.lane.b32.xlu0 %v1334_v37, %s2341_s19 }
 0x3ee   : > { %v1342_v53 = vpop.permute.xlu2 %1341 }
 0x3ef   : > { %v1362_v55 = vsel %vm836_vm1, %v951_v33, %v1342_v53 }
 0x3fe   : > { %v1340_v45 = vpop.permute.xlu0 %1339 }
 0x3ff   : > { %v1361_v47 = vsel %vm836_vm1, %v948_v60, %v1340_v45 }
 0x412   : > { %v1348_v46 = vpop.permute.xlu0 %1347 }
 0x413   : > { %v1363_v48 = vsel %vm874_vm2, %v1361_v47, %v1348_v46 }
 0x41a   : > { %v1356_v50 = vpop.permute.xlu0 %1355  ;;  %v1350_v54 = vpop.permute.xlu1 %1349 }
 0x41b   : > { %v1366_v51 = vsel %vm1365_vm9, %v1363_v48, %v1356_v50  ;;  %v1364_v56 = vsel %vm874_vm2, %v1362_v55, %v1350_v54 }
 0x41c   : > { %1798 = vmatmul.msk.f32.vlgmr.msra.gmra.mxu3 %vm715_vm0, %v1366_v51 }
 0x422   : > { %v1358_v57 = vpop.permute.xlu0 %1357 }
 0x423   : > { %v1367_v58 = vsel %vm1365_vm9, %v1364_v56, %v1358_v57 }
 0x424   : > { %1799 = vmatmul.msk.f32.gmra.mxu3 %vm715_vm0, %v1367_v58 }
 0x425   : > { %2229 = shalt.err (!%p2226_p12)
}
 0x426   : > { %s2343_s21 = smov 128   ;;  %v1374_v59 = vld [vmem:[#allocation4] sm:$0xff]  ;;  %v1375_v32 = vld [vmem:[#allocation4 + $0x8] sm:$0xff]  ;;  %s2909_s0 = sld [smem:[#allocation38_spill]] }
 0x427   : > { %1836 = dma.vmem_to_hbm [thread:$0]  (%p2498_p7), %s1469_s27, 1024, %s1471_s29, %s1432_s17, %s2343_s21, %s2343_s21, %s2339_s7  }
 0x428   : > { %s1811_s30 = sshll.u32 %s2320_s24, 4  ;;  %s678_s5 = scalar_lea.vmem [#allocation17], %s2578_s13 }
 0x429   : > { %s2910_s27 = sld [smem:[#allocation39_spill]]  ;;  %s1446_s17 = sshll.u32 %s678_s5, 4  ;;  %s1447_s17 = int_to_ptr.vmem [resolvable:$true] %s1446_s17 }
 0x42a   : > { %s1427_s24 = scalar_lea.sflag [#allocation7], %s2575_s1 }
 0x42c   : > { %v1959_v63 = vld [vmem:[%s2909_s0] ss:$0 sm:$0xff] }
 0x42f   : > { %s1445_s29 = scalar_lea.hbm %s2910_s27, %s1811_s30  ;;  %s2250_s20 = scalar_lea.hbm %s2910_s27, 32 }
 0x430   : > { %s1448_s28 = sshll.u32 %s1445_s29, 4  ;;  %s1449_s28 = int_to_ptr.hbm [resolvable:$true] %s1448_s28 }
 0x431   : > { %s2244_s10 = sshra.s32 %s1449_s28, 4  ;;  %s2245_s10 = int_to_ptr.hbm [resolvable:$true] %s2244_s10 }
 0x432   : > { %s2246_s18 = scalar_lea.hbm %s2245_s10, 16  ;;  %p2251_p5 = scmp.lt.s32.totalorder %s2245_s10, %s2910_s27 }
 0x433   : > { %p2247_p13 = scmp.ne.s32.totalorder %s2245_s10, %s2246_s18  ;;  %p2252_p9 = scmp.lt.s32.totalorder %s2250_s20, %s2246_s18 }
 0x435   : > { %p2248_p0 = pnand %p2247_p13, %p2498_p7  ;;  %p2253_p1 = por %p2252_p9, %p2251_p5 }
 0x437   : > { %p2249_p3 = pneg %p2248_p0 }
 0x439   : > { %p2254_p2 = pnand %p2253_p1, %p2249_p3 }
 0x49f   : > { %v1403_v61 = vpop.f32.mrf.mxu3 }
 0x4a0   : > { %v1409_v62 = vadd.f32 %v1403_v61, %v1374_v59 }
 0x4a2   : > { %1411 = vst.msk [vmem:[#allocation4] sm:$0xff] %vm715_vm0, %v1409_v62 }
 0x4a7   : > { %v1406_v34 = vpop.f32.mrf.mxu3 }
 0x4a8   : > { %v1410_v0 = vadd.f32 %v1406_v34, %v1375_v32 }
 0x4a9   : > { %v1416_v1 = vld [vmem:[#allocation4] sm:$0xff] }
 0x4aa   : > { %1412 = vst.msk [vmem:[#allocation4 + $0x8] sm:$0xff] %vm715_vm0, %v1410_v0  ;;  %v1422_v2 = vadd.f32 %v1959_v63, %v1416_v1 }
 0x4ac   : > { %1424 = vst.msk [vmem:[%s678_s5] sm:$0xff] %vm715_vm0, %v1422_v2 }
 0x4b1   : > { %v1417_v3 = vld [vmem:[#allocation4 + $0x8] sm:$0xff] }
 0x4b2   : > { %v1423_v4 = vadd.f32 %v1959_v63, %v1417_v3 }
 0x4b4   : > { %1425 = vst.msk [vmem:[%s678_s5 + $0x8] sm:$0xff] %vm715_vm0, %v1423_v4 }
 0x4b5   : > { %2257 = shalt.err (!%p2254_p2)
}
 0x4b6   : > { %1835 = dma.vmem_to_hbm [thread:$0]  (%p2498_p7), %s1447_s17, 256, %s1449_s28, %s1427_s24, %s2343_s21, %s2343_s21, %s2339_s7  }
 0x4b7 PF: > { %s2911_s1 = sld [smem:[#allocation26_spill]] }
 0x4b8   : > { %s2913_s19 = sld [smem:[#allocation28_spill]] }
 0x4bd   : > { %s1485_s0 = sand.u32 1, %s2911_s1  }
 0x4be   : > { %p2914_p4 = scmp.ge.s32.totalorder %s2913_s19, 2  ;;  %s1486_s30 = scalar_lea.sflag [#allocation7], %s1485_s0 }
 0x4c0   : > { %p1863_p8 = pnand %p2914_p4, %p2454_p6 }
 0x4c2   : > { %p1864_p10 = pneg %p1863_p8 }
 0x4c4   : > { %2299 = dma.done.wait (%p1864_p10), %s1486_s30, 256  }
 0x4c5   : > { %2301 = vsyncadd (%p1864_p10), %s1486_s30, 4294967040  ;;  %s1496_s5 = scalar_lea.sflag [#allocation19], %s1485_s0 }
 0x4c6   : > { %2303 = dma.done.wait (%p1864_p10), %s1496_s5, 1024  }
 0x4c7   : > { %2305 = vsyncadd (%p1864_p10), %s1496_s5, 4294966272  ;;  %s37_s26 = sadd.s32 1, %s2913_s19   ;;  %s2915_s7 = sld [smem:[#allocation32_spill]] }
 0x4c8   : > { %p34_p11 = scmp.ge.s32.totalorder %s37_s26, 4   ;;  %s2916_s24 = sld [smem:[#allocation27_spill]] }
 0x4c9   : > { %s2917_s25 = sld [smem:[#allocation30_spill]]  ;;  %s2918_s21 = smov %s2312_s22 }
 0x4ca   : > { %s2919_s22 = smov %s2316_s23  ;;  %36 = sbr.rel (!%p34_p11) target bundleno = 21 (0x15), region = 198 }
 0x4cd   : > { %s2920_s23 = smov %s2915_s7 }
 0x4cf   :  { %1502 = vsyncpa [#allocation6], 1 }
 0x4d0   :  { %1504 = vsyncpa [#allocation6 + $0x1], 1 }
 0x4d1   :  { %1505 = vsyncpa [#allocation9], 1 }
 0x4d2   :  { %1507 = vsyncpa [#allocation9 + $0x1], 1 }
 0x4d3   :  { %1508 = vsyncpa [#allocation12], 1 }
 0x4d4   :  { %1509 = vsyncpa [#allocation15], 1 }
 0x4d5   :  { %1510 = vsyncpa [#allocation7], 1 }
 0x4d6   :  { %1512 = vsyncpa [#allocation7 + $0x1], 1 }
 0x4d7   :  { %1513 = vsyncpa [#allocation19], 1 }
 0x4d8   :  { %1515 = vsyncpa [#allocation19 + $0x1], 1 }

</bundles_post_ra>
